<compile_context>
chip_gen: v6e
topology: v6e:2x2x1
jax: 0.10.0
libtpu: 0.0.40
codegen_flags: <defaults>
</compile_context>

<pallas_src>
import numpy as np
import jax
import jax.numpy as jnp
from jax import lax
from jax.experimental import pallas as pl
from jax.experimental.pallas import tpu as pltpu

INPUT_DIM = 12


def make_rnn_kernel(num_layers):
    L = num_layers

    def kernel(*refs):
        # inputs: x, wih[0..L-1], whh[0..L-1], b[0..L-1], wfc, bfc ; then out ; then scratch
        x_ref = refs[0]                         # (S, TB, 12) time-major input tile
        wih_refs = refs[1:1 + L]                # layer 0: (12, H); others: (H, H)  (transposed)
        whh_refs = refs[1 + L:1 + 2 * L]        # (H, H) transposed
        b_refs = refs[1 + 2 * L:1 + 3 * L]      # (1, H)  b_ih + b_hh
        wfc_ref = refs[1 + 3 * L]               # (1, H)  fc weight row
        bfc_ref = refs[2 + 3 * L]               # (1, 1)  fc bias
        out_ref = refs[3 + 3 * L]               # (S, TB) sigmoid(fc(rnn_out))
        buf_ref = refs[4 + 3 * L]               # (S, TB, H) scratch activations

        S, TB, H = buf_ref.shape
        F = x_ref.shape[-1]

        for l in range(L):  # L is small & static -> unrolled at trace time
            wih = wih_refs[l][...]
            whh = whh_refs[l][...]
            bl = b_refs[l][...]

            # Hoisted input projection: one batched matmul over all timesteps,
            # outside the serial recurrence.
            if l == 0:
                inp = x_ref[...].reshape(S * TB, F)
            else:
                inp = buf_ref[...].reshape(S * TB, H)
            pre_all = jnp.dot(inp.astype(wih.dtype), wih,
                              preferred_element_type=jnp.float32) + bl
            buf_ref[...] = pre_all.reshape(S, TB, H)

            # Serial recurrence: h carried as loop carry (registers), loop fully
            # unrolled so the LLO scheduler can overlap adjacent steps.
            def step(t, h, whh=whh):
                h = jnp.tanh(buf_ref[t]
                             + jnp.dot(h.astype(whh.dtype), whh,
                                       preferred_element_type=jnp.float32))
                buf_ref[t] = h          # becomes next layer's (or fc's) input
                return h

            lax.fori_loop(0, S, step, jnp.zeros((TB, H), jnp.float32),
                          unroll=True)

        # fc + sigmoid tail: VPU multiply + cross-lane (XLU) reduce instead of an
        # (H, 1) MXU matmul; output is (S, TB) with batch on the lane axis.
        hall = buf_ref[...]                                      # (S, TB, H)
        wrow = wfc_ref[...].reshape(1, 1, H).astype(jnp.float32)
        logits = jnp.sum(hall * wrow, axis=-1) + bfc_ref[...]    # (S, TB)
        out_ref[...] = jax.nn.sigmoid(logits)

    return kernel


def recurrent_nn_forward(x, params, *, batch_tile=None, compute_dtype=jnp.float32):
    """x: (B, S, 12) float32 -> (B, S, 1) float32 (matches PyTorch forward).

    batch_tile: optional batch tile to grid over batch ("parallel") for v7x
    megacore / VMEM scaling. Must divide B; if < B it must be a multiple of 8
    (sublane alignment). Defaults to B.
    compute_dtype: jnp.bfloat16 casts only matmul inputs (f32 accumulation) for
    v6e/v7x MXU throughput; keep float32 on v5e and for tight tolerances.
    """
    B, S, F = x.shape
    assert F == INPUT_DIM
    L = len(params["wih"])
    H = params["wfc"].shape[1]

    bt = B if batch_tile is None else batch_tile
    assert B % bt == 0, "batch_tile must divide batch"
    assert bt == B or bt % 8 == 0, "batch_tile < B must be a multiple of 8"

    # time-major (S, B, F): time index lives on the leading Ref axis in the kernel
    x_t = jnp.transpose(x.astype(jnp.float32), (1, 0, 2))

    wih = [w.astype(compute_dtype) for w in params["wih"]]
    whh = [w.astype(compute_dtype) for w in params["whh"]]
    bias = [b.astype(jnp.float32) for b in params["b"]]
    wfc = params["wfc"].astype(jnp.float32)
    bfc = params["bfc"].astype(jnp.float32)

    in_specs = [pl.BlockSpec((S, bt, F), lambda i: (0, i, 0))]
    in_specs += [pl.BlockSpec(w.shape, lambda i: (0, 0)) for w in wih]
    in_specs += [pl.BlockSpec(w.shape, lambda i: (0, 0)) for w in whh]
    in_specs += [pl.BlockSpec(b.shape, lambda i: (0, 0)) for b in bias]
    in_specs += [pl.BlockSpec(wfc.shape, lambda i: (0, 0)),
                 pl.BlockSpec(bfc.shape, lambda i: (0, 0))]

    out = pl.pallas_call(
        make_rnn_kernel(L),
        out_shape=jax.ShapeDtypeStruct((S, B), jnp.float32),
        grid=(B // bt,),
        in_specs=in_specs,
        out_specs=pl.BlockSpec((S, bt), lambda i: (0, i)),
        scratch_shapes=[pltpu.VMEM((S, bt, H), jnp.float32)],
        compiler_params=pltpu.CompilerParams(
            dimension_semantics=("parallel",)),   # engages both TCs on v7x
    )(x_t, *wih, *whh, *bias, wfc, bfc)

    return jnp.transpose(out)[:, :, None]   # (B, S, 1)


def init_params(key, hidden_layer, hidden_dim):
    """Deterministic init mirroring nn.RNN/nn.Linear parameter shapes."""
    H, L = hidden_dim, hidden_layer
    bound = 1.0 / np.sqrt(H)
    keys = jax.random.split(key, 4 * L + 2)

    raw = []  # per-layer (W_ih, W_hh, b_ih, b_hh) in PyTorch shapes
    for l in range(L):
        in_dim = INPUT_DIM if l == 0 else H
        k0, k1, k2, k3 = keys[4 * l: 4 * l + 4]
        W_ih = jax.random.uniform(k0, (H, in_dim), jnp.float32, -bound, bound)
        W_hh = jax.random.uniform(k1, (H, H), jnp.float32, -bound, bound)
        b_ih = jax.random.uniform(k2, (H,), jnp.float32, -bound, bound)
        b_hh = jax.random.uniform(k3, (H,), jnp.float32, -bound, bound)
        raw.append((W_ih, W_hh, b_ih, b_hh))

    W_fc = jax.random.uniform(keys[-2], (1, H), jnp.float32, -bound, bound)
    b_fc = jax.random.uniform(keys[-1], (1,), jnp.float32, -bound, bound)

    params = {
        "wih": [W_ih.T for (W_ih, _, _, _) in raw],                    # (in_dim, H)
        "whh": [W_hh.T for (_, W_hh, _, _) in raw],                    # (H, H)
        "b": [(b_ih + b_hh)[None, :] for (_, _, b_ih, b_hh) in raw],   # (1, H)
        "wfc": W_fc,                                                   # (1, H)
        "bfc": b_fc.reshape(1, 1),                                     # (1, 1)
    }
    return params, raw, (W_fc, b_fc)


def reference_forward(x, raw, fc):
    """Pure-JAX reference of the PyTorch forward for verification."""
    B, S, _ = x.shape
    W_fc, b_fc = fc
    inp = x.astype(jnp.float32)
    for (W_ih, W_hh, b_ih, b_hh) in raw:
        ht = jnp.zeros((B, W_hh.shape[0]), jnp.float32)
        outs = []
        for t in range(S):
            ht = jnp.tanh(inp[:, t] @ W_ih.T + b_ih + ht @ W_hh.T + b_hh)
            outs.append(ht)
        inp = jnp.stack(outs, axis=1)
    return jax.nn.sigmoid(inp @ W_fc.T + b_fc)


if __name__ == "__main__":
    hidden_layer, hidden_dim = 2, 32
    batch, seq = 2, 8

    key = jax.random.PRNGKey(0)
    kx, kp = jax.random.split(key)
    x = jax.random.normal(kx, (batch, seq, INPUT_DIM), jnp.float32)

    params, raw, fc = init_params(kp, hidden_layer, hidden_dim)

    out = recurrent_nn_forward(x, params)
    out = jax.block_until_ready(out)

    ref = reference_forward(x, raw, fc)
    assert out.shape == (batch, seq, 1)
    np.testing.assert_allclose(np.asarray(out), np.asarray(ref), rtol=1e-5, atol=1e-5)

    print("KERNEL_OK")
</pallas_src>

<mosaic_0001>
module attributes {stable_mosaic.version = 11 : i64} {
  func.func @kernel(%arg0: i32, %arg1: memref<8x2x12xf32, #tpu.memory_space<vmem>>, %arg2: memref<12x32xf32, #tpu.memory_space<vmem>>, %arg3: memref<32x32xf32, #tpu.memory_space<vmem>>, %arg4: memref<32x32xf32, #tpu.memory_space<vmem>>, %arg5: memref<32x32xf32, #tpu.memory_space<vmem>>, %arg6: memref<1x32xf32, #tpu.memory_space<vmem>>, %arg7: memref<1x32xf32, #tpu.memory_space<vmem>>, %arg8: memref<1x32xf32, #tpu.memory_space<vmem>>, %arg9: memref<1x1xf32, #tpu.memory_space<vmem>>, %arg10: memref<8x2xf32, #tpu.memory_space<vmem>>, %arg11: memref<8x2x32xf32, #tpu.memory_space<vmem>>) attributes {dimension_semantics = [#tpu.dimension_semantics<parallel>], iteration_bounds = array<i64: 1>, scalar_prefetch = 0 : i64, scratch_operands = 1 : i64, tpu.core_type = #tpu.core_type<tc>, window_params = [{transform_indices = @transform_0, window_bounds = array<i64: 8, 2, 12>}, {pipeline_mode = #tpu.pipeline_mode<synchronous>, transform_indices = @transform_1, window_bounds = array<i64: 12, 32>}, {pipeline_mode = #tpu.pipeline_mode<synchronous>, transform_indices = @transform_2, window_bounds = array<i64: 32, 32>}, {pipeline_mode = #tpu.pipeline_mode<synchronous>, transform_indices = @transform_3, window_bounds = array<i64: 32, 32>}, {pipeline_mode = #tpu.pipeline_mode<synchronous>, transform_indices = @transform_4, window_bounds = array<i64: 32, 32>}, {pipeline_mode = #tpu.pipeline_mode<synchronous>, transform_indices = @transform_5, window_bounds = array<i64: 1, 32>}, {pipeline_mode = #tpu.pipeline_mode<synchronous>, transform_indices = @transform_6, window_bounds = array<i64: 1, 32>}, {pipeline_mode = #tpu.pipeline_mode<synchronous>, transform_indices = @transform_7, window_bounds = array<i64: 1, 32>}, {pipeline_mode = #tpu.pipeline_mode<synchronous>, transform_indices = @transform_8, window_bounds = array<i64: 1, 1>}, {transform_indices = @transform_9, window_bounds = array<i64: 8, 2>}]} {
    %c0 = arith.constant 0 : index
    %c0_0 = arith.constant 0 : index
    %0 = vector.load %arg2[%c0, %c0_0] : memref<12x32xf32, #tpu.memory_space<vmem>>, vector<12x32xf32>
    %c0_1 = arith.constant 0 : index
    %c0_2 = arith.constant 0 : index
    %1 = vector.load %arg4[%c0_1, %c0_2] : memref<32x32xf32, #tpu.memory_space<vmem>>, vector<32x32xf32>
    %c0_3 = arith.constant 0 : index
    %c0_4 = arith.constant 0 : index
    %2 = vector.load %arg6[%c0_3, %c0_4] : memref<1x32xf32, #tpu.memory_space<vmem>>, vector<1x32xf32>
    %c0_5 = arith.constant 0 : index
    %c0_6 = arith.constant 0 : index
    %c0_7 = arith.constant 0 : index
    %3 = vector.load %arg1[%c0_5, %c0_6, %c0_7] : memref<8x2x12xf32, #tpu.memory_space<vmem>>, vector<8x2x12xf32>
    %4 = vector.shape_cast %3 : vector<8x2x12xf32> to vector<16x12xf32>
    %cst = arith.constant dense<0.000000e+00> : vector<16x32xf32>
    %5 = tpu.matmul %4, %0, %cst {dimension_numbers = #tpu.dot_dimension_numbers<[1], [0], [0], [1], [0, 0, 1, 1], [], []>} : vector<16x12xf32>, vector<12x32xf32>, vector<16x32xf32> -> vector<16x32xf32>
    %6 = vector.broadcast %2 : vector<1x32xf32> to vector<16x32xf32>
    %7 = arith.addf %5, %6 : vector<16x32xf32>
    %8 = vector.shape_cast %7 : vector<16x32xf32> to vector<8x2x32xf32>
    %c0_8 = arith.constant 0 : index
    %c0_9 = arith.constant 0 : index
    %c0_10 = arith.constant 0 : index
    %9 = vector.load %arg11[%c0_8, %c0_9, %c0_10] : memref<8x2x32xf32, #tpu.memory_space<vmem>>, vector<8x2x32xf32>
    tpu.vector_store %arg11[%c0_8, %c0_9, %c0_10], %8 {strides = array<i32>} : memref<8x2x32xf32, #tpu.memory_space<vmem>>, vector<8x2x32xf32>,
    %cst_11 = arith.constant 0.000000e+00 : f32
    %10 = vector.broadcast %cst_11 : f32 to vector<2x32xf32>
    %c0_i32 = arith.constant 0 : i32
    %11 = arith.index_cast %c0_i32 : i32 to index
    %c0_12 = arith.constant 0 : index
    %c0_13 = arith.constant 0 : index
    %12 = vector.load %arg11[%11, %c0_12, %c0_13] : memref<8x2x32xf32, #tpu.memory_space<vmem>>, vector<1x2x32xf32>
    %13 = vector.shape_cast %12 : vector<1x2x32xf32> to vector<2x32xf32>
    %cst_14 = arith.constant dense<0.000000e+00> : vector<2x32xf32>
    %14 = tpu.matmul %10, %1, %cst_14 {dimension_numbers = #tpu.dot_dimension_numbers<[1], [0], [0], [1], [0, 0, 1, 1], [], []>} : vector<2x32xf32>, vector<32x32xf32>, vector<2x32xf32> -> vector<2x32xf32>
    %15 = arith.addf %13, %14 : vector<2x32xf32>
    %16 = math.tanh %15 : vector<2x32xf32>
    %17 = arith.index_cast %c0_i32 : i32 to index
    %c0_15 = arith.constant 0 : index
    %c0_16 = arith.constant 0 : index
    %18 = vector.load %arg11[%17, %c0_15, %c0_16] : memref<8x2x32xf32, #tpu.memory_space<vmem>>, vector<1x2x32xf32>
    %19 = vector.shape_cast %18 : vector<1x2x32xf32> to vector<2x32xf32>
    %20 = vector.shape_cast %16 : vector<2x32xf32> to vector<1x2x32xf32>
    tpu.vector_store %arg11[%17, %c0_15, %c0_16], %20 {strides = array<i32>} : memref<8x2x32xf32, #tpu.memory_space<vmem>>, vector<1x2x32xf32>,
    %c1_i32 = arith.constant 1 : i32
    %21 = arith.index_cast %c1_i32 : i32 to index
    %c0_17 = arith.constant 0 : index
    %c0_18 = arith.constant 0 : index
    %22 = vector.load %arg11[%21, %c0_17, %c0_18] : memref<8x2x32xf32, #tpu.memory_space<vmem>>, vector<1x2x32xf32>
    %23 = vector.shape_cast %22 : vector<1x2x32xf32> to vector<2x32xf32>
    %cst_19 = arith.constant dense<0.000000e+00> : vector<2x32xf32>
    %24 = tpu.matmul %16, %1, %cst_19 {dimension_numbers = #tpu.dot_dimension_numbers<[1], [0], [0], [1], [0, 0, 1, 1], [], []>} : vector<2x32xf32>, vector<32x32xf32>, vector<2x32xf32> -> vector<2x32xf32>
    %25 = arith.addf %23, %24 : vector<2x32xf32>
    %26 = math.tanh %25 : vector<2x32xf32>
    %27 = arith.index_cast %c1_i32 : i32 to index
    %c0_20 = arith.constant 0 : index
    %c0_21 = arith.constant 0 : index
    %28 = vector.load %arg11[%27, %c0_20, %c0_21] : memref<8x2x32xf32, #tpu.memory_space<vmem>>, vector<1x2x32xf32>
    %29 = vector.shape_cast %28 : vector<1x2x32xf32> to vector<2x32xf32>
    %30 = vector.shape_cast %26 : vector<2x32xf32> to vector<1x2x32xf32>
    tpu.vector_store %arg11[%27, %c0_20, %c0_21], %30 {strides = array<i32>} : memref<8x2x32xf32, #tpu.memory_space<vmem>>, vector<1x2x32xf32>,
    %c2_i32 = arith.constant 2 : i32
    %31 = arith.index_cast %c2_i32 : i32 to index
    %c0_22 = arith.constant 0 : index
    %c0_23 = arith.constant 0 : index
    %32 = vector.load %arg11[%31, %c0_22, %c0_23] : memref<8x2x32xf32, #tpu.memory_space<vmem>>, vector<1x2x32xf32>
    %33 = vector.shape_cast %32 : vector<1x2x32xf32> to vector<2x32xf32>
    %cst_24 = arith.constant dense<0.000000e+00> : vector<2x32xf32>
    %34 = tpu.matmul %26, %1, %cst_24 {dimension_numbers = #tpu.dot_dimension_numbers<[1], [0], [0], [1], [0, 0, 1, 1], [], []>} : vector<2x32xf32>, vector<32x32xf32>, vector<2x32xf32> -> vector<2x32xf32>
    %35 = arith.addf %33, %34 : vector<2x32xf32>
    %36 = math.tanh %35 : vector<2x32xf32>
    %37 = arith.index_cast %c2_i32 : i32 to index
    %c0_25 = arith.constant 0 : index
    %c0_26 = arith.constant 0 : index
    %38 = vector.load %arg11[%37, %c0_25, %c0_26] : memref<8x2x32xf32, #tpu.memory_space<vmem>>, vector<1x2x32xf32>
    %39 = vector.shape_cast %38 : vector<1x2x32xf32> to vector<2x32xf32>
    %40 = vector.shape_cast %36 : vector<2x32xf32> to vector<1x2x32xf32>
    tpu.vector_store %arg11[%37, %c0_25, %c0_26], %40 {strides = array<i32>} : memref<8x2x32xf32, #tpu.memory_space<vmem>>, vector<1x2x32xf32>,
    %c3_i32 = arith.constant 3 : i32
    %41 = arith.index_cast %c3_i32 : i32 to index
    %c0_27 = arith.constant 0 : index
    %c0_28 = arith.constant 0 : index
    %42 = vector.load %arg11[%41, %c0_27, %c0_28] : memref<8x2x32xf32, #tpu.memory_space<vmem>>, vector<1x2x32xf32>
    %43 = vector.shape_cast %42 : vector<1x2x32xf32> to vector<2x32xf32>
    %cst_29 = arith.constant dense<0.000000e+00> : vector<2x32xf32>
    %44 = tpu.matmul %36, %1, %cst_29 {dimension_numbers = #tpu.dot_dimension_numbers<[1], [0], [0], [1], [0, 0, 1, 1], [], []>} : vector<2x32xf32>, vector<32x32xf32>, vector<2x32xf32> -> vector<2x32xf32>
    %45 = arith.addf %43, %44 : vector<2x32xf32>
    %46 = math.tanh %45 : vector<2x32xf32>
    %47 = arith.index_cast %c3_i32 : i32 to index
    %c0_30 = arith.constant 0 : index
    %c0_31 = arith.constant 0 : index
    %48 = vector.load %arg11[%47, %c0_30, %c0_31] : memref<8x2x32xf32, #tpu.memory_space<vmem>>, vector<1x2x32xf32>
    %49 = vector.shape_cast %48 : vector<1x2x32xf32> to vector<2x32xf32>
    %50 = vector.shape_cast %46 : vector<2x32xf32> to vector<1x2x32xf32>
    tpu.vector_store %arg11[%47, %c0_30, %c0_31], %50 {strides = array<i32>} : memref<8x2x32xf32, #tpu.memory_space<vmem>>, vector<1x2x32xf32>,
    %c4_i32 = arith.constant 4 : i32
    %51 = arith.index_cast %c4_i32 : i32 to index
    %c0_32 = arith.constant 0 : index
    %c0_33 = arith.constant 0 : index
    %52 = vector.load %arg11[%51, %c0_32, %c0_33] : memref<8x2x32xf32, #tpu.memory_space<vmem>>, vector<1x2x32xf32>
    %53 = vector.shape_cast %52 : vector<1x2x32xf32> to vector<2x32xf32>
    %cst_34 = arith.constant dense<0.000000e+00> : vector<2x32xf32>
    %54 = tpu.matmul %46, %1, %cst_34 {dimension_numbers = #tpu.dot_dimension_numbers<[1], [0], [0], [1], [0, 0, 1, 1], [], []>} : vector<2x32xf32>, vector<32x32xf32>, vector<2x32xf32> -> vector<2x32xf32>
    %55 = arith.addf %53, %54 : vector<2x32xf32>
    %56 = math.tanh %55 : vector<2x32xf32>
    %57 = arith.index_cast %c4_i32 : i32 to index
    %c0_35 = arith.constant 0 : index
    %c0_36 = arith.constant 0 : index
    %58 = vector.load %arg11[%57, %c0_35, %c0_36] : memref<8x2x32xf32, #tpu.memory_space<vmem>>, vector<1x2x32xf32>
    %59 = vector.shape_cast %58 : vector<1x2x32xf32> to vector<2x32xf32>
    %60 = vector.shape_cast %56 : vector<2x32xf32> to vector<1x2x32xf32>
    tpu.vector_store %arg11[%57, %c0_35, %c0_36], %60 {strides = array<i32>} : memref<8x2x32xf32, #tpu.memory_space<vmem>>, vector<1x2x32xf32>,
    %c5_i32 = arith.constant 5 : i32
    %61 = arith.index_cast %c5_i32 : i32 to index
    %c0_37 = arith.constant 0 : index
    %c0_38 = arith.constant 0 : index
    %62 = vector.load %arg11[%61, %c0_37, %c0_38] : memref<8x2x32xf32, #tpu.memory_space<vmem>>, vector<1x2x32xf32>
    %63 = vector.shape_cast %62 : vector<1x2x32xf32> to vector<2x32xf32>
    %cst_39 = arith.constant dense<0.000000e+00> : vector<2x32xf32>
    %64 = tpu.matmul %56, %1, %cst_39 {dimension_numbers = #tpu.dot_dimension_numbers<[1], [0], [0], [1], [0, 0, 1, 1], [], []>} : vector<2x32xf32>, vector<32x32xf32>, vector<2x32xf32> -> vector<2x32xf32>
    %65 = arith.addf %63, %64 : vector<2x32xf32>
    %66 = math.tanh %65 : vector<2x32xf32>
    %67 = arith.index_cast %c5_i32 : i32 to index
    %c0_40 = arith.constant 0 : index
    %c0_41 = arith.constant 0 : index
    %68 = vector.load %arg11[%67, %c0_40, %c0_41] : memref<8x2x32xf32, #tpu.memory_space<vmem>>, vector<1x2x32xf32>
    %69 = vector.shape_cast %68 : vector<1x2x32xf32> to vector<2x32xf32>
    %70 = vector.shape_cast %66 : vector<2x32xf32> to vector<1x2x32xf32>
    tpu.vector_store %arg11[%67, %c0_40, %c0_41], %70 {strides = array<i32>} : memref<8x2x32xf32, #tpu.memory_space<vmem>>, vector<1x2x32xf32>,
    %c6_i32 = arith.constant 6 : i32
    %71 = arith.index_cast %c6_i32 : i32 to index
    %c0_42 = arith.constant 0 : index
    %c0_43 = arith.constant 0 : index
    %72 = vector.load %arg11[%71, %c0_42, %c0_43] : memref<8x2x32xf32, #tpu.memory_space<vmem>>, vector<1x2x32xf32>
    %73 = vector.shape_cast %72 : vector<1x2x32xf32> to vector<2x32xf32>
    %cst_44 = arith.constant dense<0.000000e+00> : vector<2x32xf32>
    %74 = tpu.matmul %66, %1, %cst_44 {dimension_numbers = #tpu.dot_dimension_numbers<[1], [0], [0], [1], [0, 0, 1, 1], [], []>} : vector<2x32xf32>, vector<32x32xf32>, vector<2x32xf32> -> vector<2x32xf32>
    %75 = arith.addf %73, %74 : vector<2x32xf32>
    %76 = math.tanh %75 : vector<2x32xf32>
    %77 = arith.index_cast %c6_i32 : i32 to index
    %c0_45 = arith.constant 0 : index
    %c0_46 = arith.constant 0 : index
    %78 = vector.load %arg11[%77, %c0_45, %c0_46] : memref<8x2x32xf32, #tpu.memory_space<vmem>>, vector<1x2x32xf32>
    %79 = vector.shape_cast %78 : vector<1x2x32xf32> to vector<2x32xf32>
    %80 = vector.shape_cast %76 : vector<2x32xf32> to vector<1x2x32xf32>
    tpu.vector_store %arg11[%77, %c0_45, %c0_46], %80 {strides = array<i32>} : memref<8x2x32xf32, #tpu.memory_space<vmem>>, vector<1x2x32xf32>,
    %c7_i32 = arith.constant 7 : i32
    %81 = arith.index_cast %c7_i32 : i32 to index
    %c0_47 = arith.constant 0 : index
    %c0_48 = arith.constant 0 : index
    %82 = vector.load %arg11[%81, %c0_47, %c0_48] : memref<8x2x32xf32, #tpu.memory_space<vmem>>, vector<1x2x32xf32>
    %83 = vector.shape_cast %82 : vector<1x2x32xf32> to vector<2x32xf32>
    %cst_49 = arith.constant dense<0.000000e+00> : vector<2x32xf32>
    %84 = tpu.matmul %76, %1, %cst_49 {dimension_numbers = #tpu.dot_dimension_numbers<[1], [0], [0], [1], [0, 0, 1, 1], [], []>} : vector<2x32xf32>, vector<32x32xf32>, vector<2x32xf32> -> vector<2x32xf32>
    %85 = arith.addf %83, %84 : vector<2x32xf32>
    %86 = math.tanh %85 : vector<2x32xf32>
    %87 = arith.index_cast %c7_i32 : i32 to index
    %c0_50 = arith.constant 0 : index
    %c0_51 = arith.constant 0 : index
    %88 = vector.load %arg11[%87, %c0_50, %c0_51] : memref<8x2x32xf32, #tpu.memory_space<vmem>>, vector<1x2x32xf32>
    %89 = vector.shape_cast %88 : vector<1x2x32xf32> to vector<2x32xf32>
    %90 = vector.shape_cast %86 : vector<2x32xf32> to vector<1x2x32xf32>
    tpu.vector_store %arg11[%87, %c0_50, %c0_51], %90 {strides = array<i32>} : memref<8x2x32xf32, #tpu.memory_space<vmem>>, vector<1x2x32xf32>,
    %c8_i32 = arith.constant 8 : i32
    %c0_52 = arith.constant 0 : index
    %c0_53 = arith.constant 0 : index
    %91 = vector.load %arg3[%c0_52, %c0_53] : memref<32x32xf32, #tpu.memory_space<vmem>>, vector<32x32xf32>
    %c0_54 = arith.constant 0 : index
    %c0_55 = arith.constant 0 : index
    %92 = vector.load %arg5[%c0_54, %c0_55] : memref<32x32xf32, #tpu.memory_space<vmem>>, vector<32x32xf32>
    %c0_56 = arith.constant 0 : index
    %c0_57 = arith.constant 0 : index
    %93 = vector.load %arg7[%c0_56, %c0_57] : memref<1x32xf32, #tpu.memory_space<vmem>>, vector<1x32xf32>
    %c0_58 = arith.constant 0 : index
    %c0_59 = arith.constant 0 : index
    %c0_60 = arith.constant 0 : index
    %94 = vector.load %arg11[%c0_58, %c0_59, %c0_60] : memref<8x2x32xf32, #tpu.memory_space<vmem>>, vector<8x2x32xf32>
    %95 = vector.shape_cast %94 : vector<8x2x32xf32> to vector<16x32xf32>
    %cst_61 = arith.constant dense<0.000000e+00> : vector<16x32xf32>
    %96 = tpu.matmul %95, %91, %cst_61 {dimension_numbers = #tpu.dot_dimension_numbers<[1], [0], [0], [1], [0, 0, 1, 1], [], []>} : vector<16x32xf32>, vector<32x32xf32>, vector<16x32xf32> -> vector<16x32xf32>
    %97 = vector.broadcast %93 : vector<1x32xf32> to vector<16x32xf32>
    %98 = arith.addf %96, %97 : vector<16x32xf32>
    %99 = vector.shape_cast %98 : vector<16x32xf32> to vector<8x2x32xf32>
    %c0_62 = arith.constant 0 : index
    %c0_63 = arith.constant 0 : index
    %c0_64 = arith.constant 0 : index
    %100 = vector.load %arg11[%c0_62, %c0_63, %c0_64] : memref<8x2x32xf32, #tpu.memory_space<vmem>>, vector<8x2x32xf32>
    tpu.vector_store %arg11[%c0_62, %c0_63, %c0_64], %99 {strides = array<i32>} : memref<8x2x32xf32, #tpu.memory_space<vmem>>, vector<8x2x32xf32>,
    %cst_65 = arith.constant 0.000000e+00 : f32
    %101 = vector.broadcast %cst_65 : f32 to vector<2x32xf32>
    %c0_i32_66 = arith.constant 0 : i32
    %102 = arith.index_cast %c0_i32_66 : i32 to index
    %c0_67 = arith.constant 0 : index
    %c0_68 = arith.constant 0 : index
    %103 = vector.load %arg11[%102, %c0_67, %c0_68] : memref<8x2x32xf32, #tpu.memory_space<vmem>>, vector<1x2x32xf32>
    %104 = vector.shape_cast %103 : vector<1x2x32xf32> to vector<2x32xf32>
    %cst_69 = arith.constant dense<0.000000e+00> : vector<2x32xf32>
    %105 = tpu.matmul %101, %92, %cst_69 {dimension_numbers = #tpu.dot_dimension_numbers<[1], [0], [0], [1], [0, 0, 1, 1], [], []>} : vector<2x32xf32>, vector<32x32xf32>, vector<2x32xf32> -> vector<2x32xf32>
    %106 = arith.addf %104, %105 : vector<2x32xf32>
    %107 = math.tanh %106 : vector<2x32xf32>
    %108 = arith.index_cast %c0_i32_66 : i32 to index
    %c0_70 = arith.constant 0 : index
    %c0_71 = arith.constant 0 : index
    %109 = vector.load %arg11[%108, %c0_70, %c0_71] : memref<8x2x32xf32, #tpu.memory_space<vmem>>, vector<1x2x32xf32>
    %110 = vector.shape_cast %109 : vector<1x2x32xf32> to vector<2x32xf32>
    %111 = vector.shape_cast %107 : vector<2x32xf32> to vector<1x2x32xf32>
    tpu.vector_store %arg11[%108, %c0_70, %c0_71], %111 {strides = array<i32>} : memref<8x2x32xf32, #tpu.memory_space<vmem>>, vector<1x2x32xf32>,
    %c1_i32_72 = arith.constant 1 : i32
    %112 = arith.index_cast %c1_i32_72 : i32 to index
    %c0_73 = arith.constant 0 : index
    %c0_74 = arith.constant 0 : index
    %113 = vector.load %arg11[%112, %c0_73, %c0_74] : memref<8x2x32xf32, #tpu.memory_space<vmem>>, vector<1x2x32xf32>
    %114 = vector.shape_cast %113 : vector<1x2x32xf32> to vector<2x32xf32>
    %cst_75 = arith.constant dense<0.000000e+00> : vector<2x32xf32>
    %115 = tpu.matmul %107, %92, %cst_75 {dimension_numbers = #tpu.dot_dimension_numbers<[1], [0], [0], [1], [0, 0, 1, 1], [], []>} : vector<2x32xf32>, vector<32x32xf32>, vector<2x32xf32> -> vector<2x32xf32>
    %116 = arith.addf %114, %115 : vector<2x32xf32>
    %117 = math.tanh %116 : vector<2x32xf32>
    %118 = arith.index_cast %c1_i32_72 : i32 to index
    %c0_76 = arith.constant 0 : index
    %c0_77 = arith.constant 0 : index
    %119 = vector.load %arg11[%118, %c0_76, %c0_77] : memref<8x2x32xf32, #tpu.memory_space<vmem>>, vector<1x2x32xf32>
    %120 = vector.shape_cast %119 : vector<1x2x32xf32> to vector<2x32xf32>
    %121 = vector.shape_cast %117 : vector<2x32xf32> to vector<1x2x32xf32>
    tpu.vector_store %arg11[%118, %c0_76, %c0_77], %121 {strides = array<i32>} : memref<8x2x32xf32, #tpu.memory_space<vmem>>, vector<1x2x32xf32>,
    %c2_i32_78 = arith.constant 2 : i32
    %122 = arith.index_cast %c2_i32_78 : i32 to index
    %c0_79 = arith.constant 0 : index
    %c0_80 = arith.constant 0 : index
    %123 = vector.load %arg11[%122, %c0_79, %c0_80] : memref<8x2x32xf32, #tpu.memory_space<vmem>>, vector<1x2x32xf32>
    %124 = vector.shape_cast %123 : vector<1x2x32xf32> to vector<2x32xf32>
    %cst_81 = arith.constant dense<0.000000e+00> : vector<2x32xf32>
    %125 = tpu.matmul %117, %92, %cst_81 {dimension_numbers = #tpu.dot_dimension_numbers<[1], [0], [0], [1], [0, 0, 1, 1], [], []>} : vector<2x32xf32>, vector<32x32xf32>, vector<2x32xf32> -> vector<2x32xf32>
    %126 = arith.addf %124, %125 : vector<2x32xf32>
    %127 = math.tanh %126 : vector<2x32xf32>
    %128 = arith.index_cast %c2_i32_78 : i32 to index
    %c0_82 = arith.constant 0 : index
    %c0_83 = arith.constant 0 : index
    %129 = vector.load %arg11[%128, %c0_82, %c0_83] : memref<8x2x32xf32, #tpu.memory_space<vmem>>, vector<1x2x32xf32>
    %130 = vector.shape_cast %129 : vector<1x2x32xf32> to vector<2x32xf32>
    %131 = vector.shape_cast %127 : vector<2x32xf32> to vector<1x2x32xf32>
    tpu.vector_store %arg11[%128, %c0_82, %c0_83], %131 {strides = array<i32>} : memref<8x2x32xf32, #tpu.memory_space<vmem>>, vector<1x2x32xf32>,
    %c3_i32_84 = arith.constant 3 : i32
    %132 = arith.index_cast %c3_i32_84 : i32 to index
    %c0_85 = arith.constant 0 : index
    %c0_86 = arith.constant 0 : index
    %133 = vector.load %arg11[%132, %c0_85, %c0_86] : memref<8x2x32xf32, #tpu.memory_space<vmem>>, vector<1x2x32xf32>
    %134 = vector.shape_cast %133 : vector<1x2x32xf32> to vector<2x32xf32>
    %cst_87 = arith.constant dense<0.000000e+00> : vector<2x32xf32>
    %135 = tpu.matmul %127, %92, %cst_87 {dimension_numbers = #tpu.dot_dimension_numbers<[1], [0], [0], [1], [0, 0, 1, 1], [], []>} : vector<2x32xf32>, vector<32x32xf32>, vector<2x32xf32> -> vector<2x32xf32>
    %136 = arith.addf %134, %135 : vector<2x32xf32>
    %137 = math.tanh %136 : vector<2x32xf32>
    %138 = arith.index_cast %c3_i32_84 : i32 to index
    %c0_88 = arith.constant 0 : index
    %c0_89 = arith.constant 0 : index
    %139 = vector.load %arg11[%138, %c0_88, %c0_89] : memref<8x2x32xf32, #tpu.memory_space<vmem>>, vector<1x2x32xf32>
    %140 = vector.shape_cast %139 : vector<1x2x32xf32> to vector<2x32xf32>
    %141 = vector.shape_cast %137 : vector<2x32xf32> to vector<1x2x32xf32>
    tpu.vector_store %arg11[%138, %c0_88, %c0_89], %141 {strides = array<i32>} : memref<8x2x32xf32, #tpu.memory_space<vmem>>, vector<1x2x32xf32>,
    %c4_i32_90 = arith.constant 4 : i32
    %142 = arith.index_cast %c4_i32_90 : i32 to index
    %c0_91 = arith.constant 0 : index
    %c0_92 = arith.constant 0 : index
    %143 = vector.load %arg11[%142, %c0_91, %c0_92] : memref<8x2x32xf32, #tpu.memory_space<vmem>>, vector<1x2x32xf32>
    %144 = vector.shape_cast %143 : vector<1x2x32xf32> to vector<2x32xf32>
    %cst_93 = arith.constant dense<0.000000e+00> : vector<2x32xf32>
    %145 = tpu.matmul %137, %92, %cst_93 {dimension_numbers = #tpu.dot_dimension_numbers<[1], [0], [0], [1], [0, 0, 1, 1], [], []>} : vector<2x32xf32>, vector<32x32xf32>, vector<2x32xf32> -> vector<2x32xf32>
    %146 = arith.addf %144, %145 : vector<2x32xf32>
    %147 = math.tanh %146 : vector<2x32xf32>
    %148 = arith.index_cast %c4_i32_90 : i32 to index
    %c0_94 = arith.constant 0 : index
    %c0_95 = arith.constant 0 : index
    %149 = vector.load %arg11[%148, %c0_94, %c0_95] : memref<8x2x32xf32, #tpu.memory_space<vmem>>, vector<1x2x32xf32>
    %150 = vector.shape_cast %149 : vector<1x2x32xf32> to vector<2x32xf32>
    %151 = vector.shape_cast %147 : vector<2x32xf32> to vector<1x2x32xf32>
    tpu.vector_store %arg11[%148, %c0_94, %c0_95], %151 {strides = array<i32>} : memref<8x2x32xf32, #tpu.memory_space<vmem>>, vector<1x2x32xf32>,
    %c5_i32_96 = arith.constant 5 : i32
    %152 = arith.index_cast %c5_i32_96 : i32 to index
    %c0_97 = arith.constant 0 : index
    %c0_98 = arith.constant 0 : index
    %153 = vector.load %arg11[%152, %c0_97, %c0_98] : memref<8x2x32xf32, #tpu.memory_space<vmem>>, vector<1x2x32xf32>
    %154 = vector.shape_cast %153 : vector<1x2x32xf32> to vector<2x32xf32>
    %cst_99 = arith.constant dense<0.000000e+00> : vector<2x32xf32>
    %155 = tpu.matmul %147, %92, %cst_99 {dimension_numbers = #tpu.dot_dimension_numbers<[1], [0], [0], [1], [0, 0, 1, 1], [], []>} : vector<2x32xf32>, vector<32x32xf32>, vector<2x32xf32> -> vector<2x32xf32>
    %156 = arith.addf %154, %155 : vector<2x32xf32>
    %157 = math.tanh %156 : vector<2x32xf32>
    %158 = arith.index_cast %c5_i32_96 : i32 to index
    %c0_100 = arith.constant 0 : index
    %c0_101 = arith.constant 0 : index
    %159 = vector.load %arg11[%158, %c0_100, %c0_101] : memref<8x2x32xf32, #tpu.memory_space<vmem>>, vector<1x2x32xf32>
    %160 = vector.shape_cast %159 : vector<1x2x32xf32> to vector<2x32xf32>
    %161 = vector.shape_cast %157 : vector<2x32xf32> to vector<1x2x32xf32>
    tpu.vector_store %arg11[%158, %c0_100, %c0_101], %161 {strides = array<i32>} : memref<8x2x32xf32, #tpu.memory_space<vmem>>, vector<1x2x32xf32>,
    %c6_i32_102 = arith.constant 6 : i32
    %162 = arith.index_cast %c6_i32_102 : i32 to index
    %c0_103 = arith.constant 0 : index
    %c0_104 = arith.constant 0 : index
    %163 = vector.load %arg11[%162, %c0_103, %c0_104] : memref<8x2x32xf32, #tpu.memory_space<vmem>>, vector<1x2x32xf32>
    %164 = vector.shape_cast %163 : vector<1x2x32xf32> to vector<2x32xf32>
    %cst_105 = arith.constant dense<0.000000e+00> : vector<2x32xf32>
    %165 = tpu.matmul %157, %92, %cst_105 {dimension_numbers = #tpu.dot_dimension_numbers<[1], [0], [0], [1], [0, 0, 1, 1], [], []>} : vector<2x32xf32>, vector<32x32xf32>, vector<2x32xf32> -> vector<2x32xf32>
    %166 = arith.addf %164, %165 : vector<2x32xf32>
    %167 = math.tanh %166 : vector<2x32xf32>
    %168 = arith.index_cast %c6_i32_102 : i32 to index
    %c0_106 = arith.constant 0 : index
    %c0_107 = arith.constant 0 : index
    %169 = vector.load %arg11[%168, %c0_106, %c0_107] : memref<8x2x32xf32, #tpu.memory_space<vmem>>, vector<1x2x32xf32>
    %170 = vector.shape_cast %169 : vector<1x2x32xf32> to vector<2x32xf32>
    %171 = vector.shape_cast %167 : vector<2x32xf32> to vector<1x2x32xf32>
    tpu.vector_store %arg11[%168, %c0_106, %c0_107], %171 {strides = array<i32>} : memref<8x2x32xf32, #tpu.memory_space<vmem>>, vector<1x2x32xf32>,
    %c7_i32_108 = arith.constant 7 : i32
    %172 = arith.index_cast %c7_i32_108 : i32 to index
    %c0_109 = arith.constant 0 : index
    %c0_110 = arith.constant 0 : index
    %173 = vector.load %arg11[%172, %c0_109, %c0_110] : memref<8x2x32xf32, #tpu.memory_space<vmem>>, vector<1x2x32xf32>
    %174 = vector.shape_cast %173 : vector<1x2x32xf32> to vector<2x32xf32>
    %cst_111 = arith.constant dense<0.000000e+00> : vector<2x32xf32>
    %175 = tpu.matmul %167, %92, %cst_111 {dimension_numbers = #tpu.dot_dimension_numbers<[1], [0], [0], [1], [0, 0, 1, 1], [], []>} : vector<2x32xf32>, vector<32x32xf32>, vector<2x32xf32> -> vector<2x32xf32>
    %176 = arith.addf %174, %175 : vector<2x32xf32>
    %177 = math.tanh %176 : vector<2x32xf32>
    %178 = arith.index_cast %c7_i32_108 : i32 to index
    %c0_112 = arith.constant 0 : index
    %c0_113 = arith.constant 0 : index
    %179 = vector.load %arg11[%178, %c0_112, %c0_113] : memref<8x2x32xf32, #tpu.memory_space<vmem>>, vector<1x2x32xf32>
    %180 = vector.shape_cast %179 : vector<1x2x32xf32> to vector<2x32xf32>
    %181 = vector.shape_cast %177 : vector<2x32xf32> to vector<1x2x32xf32>
    tpu.vector_store %arg11[%178, %c0_112, %c0_113], %181 {strides = array<i32>} : memref<8x2x32xf32, #tpu.memory_space<vmem>>, vector<1x2x32xf32>,
    %c8_i32_114 = arith.constant 8 : i32
    %c0_115 = arith.constant 0 : index
    %c0_116 = arith.constant 0 : index
    %c0_117 = arith.constant 0 : index
    %182 = vector.load %arg11[%c0_115, %c0_116, %c0_117] : memref<8x2x32xf32, #tpu.memory_space<vmem>>, vector<8x2x32xf32>
    %c0_118 = arith.constant 0 : index
    %c0_119 = arith.constant 0 : index
    %183 = vector.load %arg8[%c0_118, %c0_119] : memref<1x32xf32, #tpu.memory_space<vmem>>, vector<1x32xf32>
    %184 = vector.shape_cast %183 : vector<1x32xf32> to vector<1x1x32xf32>
    %185 = vector.broadcast %184 : vector<1x1x32xf32> to vector<8x2x32xf32>
    %186 = arith.mulf %182, %185 : vector<8x2x32xf32>
    %cst_120 = arith.constant dense<0.000000e+00> : vector<8x2xf32>
    %187 = vector.multi_reduction <add>, %186, %cst_120 [2] : vector<8x2x32xf32> to vector<8x2xf32>
    %c0_121 = arith.constant 0 : index
    %c0_122 = arith.constant 0 : index
    %188 = vector.load %arg9[%c0_121, %c0_122] : memref<1x1xf32, #tpu.memory_space<vmem>>, vector<1x1xf32>
    %189 = vector.broadcast %188 : vector<1x1xf32> to vector<8x2xf32>
    %190 = arith.addf %187, %189 : vector<8x2xf32>
    %191 = arith.negf %190 : vector<8x2xf32>
    %192 = math.exp %191 : vector<8x2xf32>
    %cst_123 = arith.constant 1.000000e+00 : f32
    %193 = vector.broadcast %cst_123 : f32 to vector<8x2xf32>
    %194 = arith.addf %193, %192 : vector<8x2xf32>
    %195 = arith.divf %193, %194 : vector<8x2xf32>
    %c0_124 = arith.constant 0 : index
    %c0_125 = arith.constant 0 : index
    %196 = vector.load %arg10[%c0_124, %c0_125] : memref<8x2xf32, #tpu.memory_space<vmem>>, vector<8x2xf32>
    tpu.vector_store %arg10[%c0_124, %c0_125], %195 {strides = array<i32>} : memref<8x2xf32, #tpu.memory_space<vmem>>, vector<8x2xf32>,
    return
  }
  func.func @transform_0(%arg0: i32) -> (i32, i32, i32) {
    %c0_i32 = arith.constant 0 : i32
    %c0_i32_0 = arith.constant 0 : i32
    %c0_i32_1 = arith.constant 0 : i32
    return %c0_i32, %arg0, %c0_i32_0 : i32, i32, i32
  }
  func.func @transform_1(%arg0: i32) -> (i32, i32) {
    %c0_i32 = arith.constant 0 : i32
    %c0_i32_0 = arith.constant 0 : i32
    %c0_i32_1 = arith.constant 0 : i32
    return %c0_i32, %c0_i32_0 : i32, i32
  }
  func.func @transform_2(%arg0: i32) -> (i32, i32) {
    %c0_i32 = arith.constant 0 : i32
    %c0_i32_0 = arith.constant 0 : i32
    %c0_i32_1 = arith.constant 0 : i32
    return %c0_i32, %c0_i32_0 : i32, i32
  }
  func.func @transform_3(%arg0: i32) -> (i32, i32) {
    %c0_i32 = arith.constant 0 : i32
    %c0_i32_0 = arith.constant 0 : i32
    %c0_i32_1 = arith.constant 0 : i32
    return %c0_i32, %c0_i32_0 : i32, i32
  }
  func.func @transform_4(%arg0: i32) -> (i32, i32) {
    %c0_i32 = arith.constant 0 : i32
    %c0_i32_0 = arith.constant 0 : i32
    %c0_i32_1 = arith.constant 0 : i32
    return %c0_i32, %c0_i32_0 : i32, i32
  }
  func.func @transform_5(%arg0: i32) -> (i32, i32) {
    %c0_i32 = arith.constant 0 : i32
    %c0_i32_0 = arith.constant 0 : i32
    %c0_i32_1 = arith.constant 0 : i32
    return %c0_i32, %c0_i32_0 : i32, i32
  }
  func.func @transform_6(%arg0: i32) -> (i32, i32) {
    %c0_i32 = arith.constant 0 : i32
    %c0_i32_0 = arith.constant 0 : i32
    %c0_i32_1 = arith.constant 0 : i32
    return %c0_i32, %c0_i32_0 : i32, i32
  }
  func.func @transform_7(%arg0: i32) -> (i32, i32) {
    %c0_i32 = arith.constant 0 : i32
    %c0_i32_0 = arith.constant 0 : i32
    %c0_i32_1 = arith.constant 0 : i32
    return %c0_i32, %c0_i32_0 : i32, i32
  }
  func.func @transform_8(%arg0: i32) -> (i32, i32) {
    %c0_i32 = arith.constant 0 : i32
    %c0_i32_0 = arith.constant 0 : i32
    %c0_i32_1 = arith.constant 0 : i32
    return %c0_i32, %c0_i32_0 : i32, i32
  }
  func.func @transform_9(%arg0: i32) -> (i32, i32) {
    %c0_i32 = arith.constant 0 : i32
    %c0_i32_0 = arith.constant 0 : i32
    return %c0_i32, %arg0 : i32, i32
  }
}

</mosaic_0001>

<bundles_post_ra>
// kernel: tpu_custom_call.1
= control target key start
LH: loop header
LB: loop body
LE: loop exit
PB: predicated region body
PF: predicated region fallthrough
CT: control target
= control target key end

     0   :  { %s2786_s0 = inlined_call_operand.hbm [shape: f32[8,2,12], index: 0, kind: input, shape index: {}]   ;;  %s2787_s1 = inlined_call_operand.hbm [shape: f32[12,32], index: 1, kind: input, shape index: {}]   ;;  %s2788_s2 = inlined_call_operand.hbm [shape: f32[32,32], index: 2, kind: input, shape index: {}]   ;;  %s2789_s3 = inlined_call_operand.hbm [shape: f32[32,32], index: 3, kind: input, shape index: {}]   ;;  %s2790_s4 = inlined_call_operand.hbm [shape: f32[32,32], index: 4, kind: input, shape index: {}]   ;;  %s2791_s5 = inlined_call_operand.vmem [shape: f32[1,32], index: 5, kind: input, shape index: {}]   ;;  %s2792_s6 = inlined_call_operand.vmem [shape: f32[1,32], index: 6, kind: input, shape index: {}]   ;;  %s2793_s7 = inlined_call_operand.vmem [shape: f32[1,32], index: 7, kind: input, shape index: {}]   ;;  %s2794_s8 = inlined_call_operand.<no memory space> [shape: f32[1,1], index: 8, kind: input, shape index: {}]   ;;  %s2795_s9 = inlined_call_operand.vmem [shape: f32[8,2], index: 9, kind: output, shape index: {}]  }
   0x1   :  { %v14_v0 = vstv %s2794_s8 }
   0x2   :  { %15 = vst [vmem:[#allocation3] sm:$0x1] %v14_v0 }
   0x3   :  { %16 = vsyncpa [#allocation5], 0 }
   0x4   :  { %17 = vsyncpa [#allocation7], 0 }
   0x5   :  { %18 = vsyncpa [#allocation10], 0  ;;  %s2413_s11 = smov [#allocation6]  }
   0x6   :  { %s36_s12 = sshll.u32 %s2413_s11, 4  ;;  %s37_s12 = int_to_ptr.vmem [resolvable:$true] %s36_s12 }
   0x7   :  { %s2315_s13 = scalar_lea.vmem %s37_s12, 256  ;;  %p2320_p1 = scmp.lt.s32.totalorder %s37_s12, %s37_s12 }
   0x8   :  { %p2316_p0 = scmp.ne.s32.totalorder %s37_s12, %s2315_s13  ;;  %p2321_p2 = scmp.lt.s32.totalorder %s2315_s13, %s2315_s13 }
   0xa   :  { %p2322_p3 = por %p2321_p2, %p2320_p1 }
   0xc   :  { %p2323_p4 = pnand %p2322_p3, %p2316_p0 }
   0xe   :  { %2326 = shalt.err (!%p2323_p4)
}
   0xf   :  { %s2414_s14 = smov 128   ;;  %s2415_s15 = smov 8  }
  0x10   :  { %42 = dma.hbm_to_vmem [thread:$0]  %s2787_s1, 256, %s37_s12, [#allocation7], %s2414_s14, %s2414_s14, %s2415_s15  }
  0x11   :  { %s2416_s17 = smov [#allocation9]   ;;  %s2417_s19 = smov [#allocation4]  }
  0x12   :  { %s60_s18 = sshll.u32 %s2416_s17, 4  ;;  %s24_s20 = sshll.u32 %s2417_s19, 4  ;;  %s61_s18 = int_to_ptr.vmem [resolvable:$true] %s60_s18  ;;  %s25_s20 = int_to_ptr.vmem [resolvable:$true] %s24_s20 }
  0x13   :  { %s2335_s21 = scalar_lea.vmem %s61_s18, 512  ;;  %p2340_p6 = scmp.lt.s32.totalorder %s61_s18, %s61_s18 }
  0x14   :  { %p2336_p5 = scmp.ne.s32.totalorder %s61_s18, %s2335_s21  ;;  %p2341_p7 = scmp.lt.s32.totalorder %s2335_s21, %s2335_s21 }
  0x16   :  { %p2342_p8 = por %p2341_p7, %p2340_p6 }
  0x18   :  { %p2343_p9 = pnand %p2342_p8, %p2336_p5 }
  0x1a   :  { %2346 = shalt.err (!%p2343_p9)
}
  0x1b   :  { %66 = dma.hbm_to_vmem [thread:$0]  %s2789_s3, 512, %s61_s18, [#allocation10], %s2414_s14, %s2414_s14, %s2415_s15  }
  0x1c   :  { %s2355_s1 = scalar_lea.vmem %s25_s20, 256  ;;  %p2360_p11 = scmp.lt.s32.totalorder %s25_s20, %s25_s20 }
  0x1d   :  { %p2356_p10 = scmp.ne.s32.totalorder %s25_s20, %s2355_s1  ;;  %p2361_p12 = scmp.lt.s32.totalorder %s2355_s1, %s2355_s1 }
  0x1f   :  { %p2362_p13 = por %p2361_p12, %p2360_p11 }
  0x21   :  { %p2363_p0 = pnand %p2362_p13, %p2356_p10 }
  0x23   :  { %2366 = shalt.err (!%p2363_p0)
}
  0x24   :  { %s2418_s24 = smov 32   ;;  %s2419_s25 = smov 2  }
  0x25   :  { %30 = dma.hbm_to_vmem [thread:$0]  %s2786_s0, 256, %s25_s20, [#allocation5], %s2418_s24, %s2418_s24, %s2419_s25  }
  0x26   :  { %s2420_s28 = smov [#allocation8]   ;;  %s2421_s30 = smov [#allocation11]  }
  0x27   :  { %s48_s29 = sshll.u32 %s2420_s28, 4  ;;  %s72_s10 = sshll.u32 %s2421_s30, 4  ;;  %s49_s29 = int_to_ptr.vmem [resolvable:$true] %s48_s29  ;;  %s73_s10 = int_to_ptr.vmem [resolvable:$true] %s72_s10 }
  0x28   :  { %s2375_s3 = scalar_lea.vmem %s49_s29, 512  ;;  %p2380_p2 = scmp.lt.s32.totalorder %s49_s29, %s49_s29 }
  0x29   :  { %p2376_p1 = scmp.ne.s32.totalorder %s49_s29, %s2375_s3  ;;  %p2381_p3 = scmp.lt.s32.totalorder %s2375_s3, %s2375_s3 }
  0x2b   :  { %p2382_p4 = por %p2381_p3, %p2380_p2 }
  0x2d   :  { %p2383_p5 = pnand %p2382_p4, %p2376_p1 }
  0x2f   :  { %2386 = shalt.err (!%p2383_p5)
}
  0x30   :  { %54 = dma.hbm_to_vmem [thread:$0]  %s2788_s2, 512, %s49_s29, [#allocation7], %s2414_s14, %s2414_s14, %s2415_s15  }
  0x31   :  { %s2395_s0 = scalar_lea.vmem %s73_s10, 512  ;;  %p2400_p7 = scmp.lt.s32.totalorder %s73_s10, %s73_s10 }
  0x32   :  { %p2396_p6 = scmp.ne.s32.totalorder %s73_s10, %s2395_s0  ;;  %p2401_p8 = scmp.lt.s32.totalorder %s2395_s0, %s2395_s0 }
  0x34   :  { %p2402_p9 = por %p2401_p8, %p2400_p7 }
  0x36   :  { %p2403_p10 = pnand %p2402_p9, %p2396_p6 }
  0x38   :  { %2406 = shalt.err (!%p2403_p10)
}
  0x39   :  { %78 = dma.hbm_to_vmem [thread:$0]  %s2790_s4, 512, %s73_s10, [#allocation10], %s2414_s14, %s2414_s14, %s2415_s15  }
  0x3a   :  { %2407 = dma.done.wait [#allocation5], 256  }
  0x3b   :  { %2408 = vsyncadd [#allocation5], 4294967040 }
  0x3c   :  { %2409 = dma.done.wait [#allocation7], 768  }
  0x3d   :  { %2410 = vsyncadd [#allocation7], 4294966528 }
  0x3e   :  { %2411 = dma.done.wait [#allocation10], 1024  }
  0x3f   :  { %2412 = vsyncadd [#allocation10], 4294966272  ;;  %v136_v1 = vlaneseq  ;;  %v2422_v2 = vmov 1983009808   ;;  %v2423_v4 = vmov 0.0   ;;  %vm2424_vm0 = vmmov 0  }
  0x40   :  { %v134_v3 = vunpack.c.l.s4 %v2422_v2  ;;  %2042 = vmatprep.subr.mxu1 %v2423_v4  ;;  %2050 = vmatprep.mubr.msk.f32.mxu1 %vm2424_vm0, %v2423_v4  ;;  %vm170_vm1 = vcmask 1043456   ;;  %v103_v7 = vld [vmem:[#allocation6 + $0x8] sm:$0xf]  ;;  %v102_v8 = vld [vmem:[#allocation6] sm:$0xff]  ;;  %v109_v9 = vld [vmem:[#allocation4] sm:$0x3] }
  0x41   :  { %v2510_v6 = vshrl.u32 %v136_v1, 7  ;;  %2035 = vmatprep.subr.msk.mxu0 %vm170_vm1, %v103_v7  ;;  %v110_v11 = vld [vmem:[#allocation4 + $0x2] sm:$0x3]  ;;  %v111_v12 = vld [vmem:[#allocation4 + $0x4] sm:$0x3]  ;;  %v2515_v21 = vld [vmem:[#allocation9 + $0x18] sm:$0xff] }
  0x42   :  { %v135_v5 = vunpack.c.0.s8 %v134_v3  ;;  %v112_v13 = vld [vmem:[#allocation4 + $0x6] sm:$0x3]  ;;  %2036 = vmatpush3.msk.msra.mxu0 %vm170_vm1, %v103_v7  ;;  %v131_v14 = vcombine.low %v109_v9, %v110_v11  ;;  %v113_v16 = vld [vmem:[#allocation4 + $0x8] sm:$0x3]  ;;  %v114_v17 = vld [vmem:[#allocation4 + $0xa] sm:$0x3]  ;;  %2043 = vmatpush3.msra.mxu1 %v2515_v21 }
  0x43   :  { %v132_v15 = vcombine.low %v111_v12, %v112_v13  ;;  %v115_v18 = vld [vmem:[#allocation4 + $0xc] sm:$0x3]  ;;  %2037 = vmatprep.subr.mxu0 %v102_v8  ;;  %v116_v19 = vld [vmem:[#allocation4 + $0xe] sm:$0x3]  ;;  %v148_v20 = vcombine.low %v113_v16, %v114_v17  ;;  %v2517_v22 = vld [vmem:[#allocation9 + $0x10] sm:$0xff]  ;;  %vm165_vm2 = vcmask 97280   ;;  %2044 = vmatprep.subr.mxu1 %v2423_v4 }
  0x44   :  { %v2513_v10 = vsub.s32 %v135_v5, %v2510_v6  ;;  %2038 = vmatpush3.msra.mxu0 %v102_v8  ;;  %v149_v25 = vcombine.low %v115_v18, %v116_v19  ;;  %v2524_v27 = vld [vmem:[#allocation9 + $0x8] sm:$0xff]  ;;  %2045 = vmatpush3.msra.mxu1 %v2517_v22  ;;  %v2530_v30 = vld [vmem:[#allocation9] sm:$0xff]  ;;  %vm293_vm3 = vcmask 254976   ;;  %vm303_vm4 = vcmask 261120  }
  0x45   :  { %2053 = vmatprep.subr.mxu0 %v2423_v4  ;;  %2046 = vmatprep.subr.mxu1 %v2423_v4  ;;  %v1914_v32 = vld [vmem:[%s2791_s5] ss:$0 sm:$0xff]  ;;  %vm1890_vm5 = vcmask 1041409   ;;  %vm1892_vm6 = vcmask 1042434   ;;  %vm1894_vm7 = vcmask 1043459   ;;  %vm1896_vm8 = vcmask 1044484  }
  0x46   :  { %v139_v23 = vrot.slane %v131_v14, %v2513_v10  ;;  %v146_v24 = vrot.slane %v132_v15, %v2513_v10  ;;  %v156_v26 = vrot.slane %v148_v20, %v2513_v10  ;;  %v163_v29 = vrot.slane %v149_v25, %v2513_v10  ;;  %2047 = vmatpush3.msra.mxu1 %v2524_v27 }
  0x47   :  { %2048 = vmatprep.subr.mxu1 %v2423_v4  ;;  %vm1898_vm9 = vcmask 1045509   ;;  %vm1900_vm10 = vcmask 1046534   ;;  %vm1902_vm11 = vcmask 1047559   ;;  %vm1905_vm12 = vcmask 15360  }
  0x48   :  { %v147_v28 = vcombine.low %v139_v23, %v146_v24  ;;  %v164_v31 = vcombine.low %v156_v26, %v163_v29  ;;  %2049 = vmatpush3.msra.mxu1 %v2530_v30 }
  0x49   :  { %2051 = vmatmul.mubr.f32.vlgmr.msra.gmra.mxu1 %v2423_v4  ;;  %2064 = vmatprep.subr.mxu1 %v2423_v4 }
  0x4a   :  { %2039 = vmatprep.mubr.msk.f32.mxu0 %vm165_vm2, %v147_v28  ;;  %2065 = vmatpush3.msra.mxu1 %v2515_v21 }
  0x4b   :  { %2040 = vmatmul.mubr.msk.f32.vlgmr.msra.gmra.mxu0 %vm165_vm2, %v164_v31  ;;  %2066 = vmatprep.subr.mxu1 %v2423_v4  ;;  %v929_v31 = vld [vmem:[#allocation8 + $0x18] sm:$0xff] }
  0x4c   :  { %2054 = vmatpush3.msra.mxu0 %v2515_v21  ;;  %2061 = vmatprep.mubr.msk.f32.mxu0 %vm2424_vm0, %v2423_v4 }
  0x4d   :  { %2055 = vmatprep.subr.mxu0 %v2423_v4  ;;  %2067 = vmatpush3.msra.mxu1 %v2517_v22 }
  0x4e   :  { %2056 = vmatpush3.msra.mxu0 %v2517_v22  ;;  %2068 = vmatprep.subr.mxu1 %v2423_v4 }
  0x4f   :  { %2057 = vmatprep.subr.mxu0 %v2423_v4  ;;  %2069 = vmatpush3.msra.mxu1 %v2524_v27 }
  0x50   :  { %2058 = vmatpush3.msra.mxu0 %v2524_v27  ;;  %2072 = vmatprep.mubr.msk.f32.mxu1 %vm2424_vm0, %v2423_v4 }
  0x51   :  { %2059 = vmatprep.subr.mxu0 %v2423_v4  ;;  %2070 = vmatprep.subr.mxu1 %v2423_v4 }
  0x52   :  { %2060 = vmatpush3.msra.mxu0 %v2530_v30  ;;  %2071 = vmatpush3.msra.mxu1 %v2530_v30 }
  0x53   :  { %2075 = vmatprep.subr.mxu0 %v2423_v4  ;;  %2086 = vmatprep.subr.mxu1 %v2423_v4 }
 0x109   :  { %v373_v35 = vpop.f32.mrf.mxu1 }
 0x10b   :  { %v2041_v33 = vpop.f32.mrf.mxu0  ;;  %v2052_v40 = vpop.f32.mrf.mxu1 }
 0x10c   :  { %v246_v34 = vadd.f32 %v2041_v33, %v1914_v32  ;;  %v927_v33 = vld [vmem:[#allocation8 + $0x8] sm:$0xff] }
 0x10d   :  { %v240_v36 = vpop.f32.mrf.mxu0 }
 0x10e   :  { %v268_v37 = vcombine.high %v246_v34, %v246_v34  ;;  %v275_v38 = vrot.slane %v246_v34, %v2513_v10  ;;  %v241_v39 = vadd.f32 %v1914_v32, %v240_v36  ;;  %v928_v32 = vld [vmem:[#allocation8 + $0x10] sm:$0xff]  ;;  %v926_v34 = vld [vmem:[#allocation8] sm:$0xff] }
 0x10f   :  { %v2643_v36 = vld [vmem:[#allocation11 + $0x10] sm:$0xff] }
 0x110   :  { %v282_v41 = vrot.slane %v268_v37, %v2513_v10  ;;  %v283_v42 = vcombine.high %v275_v38, %v275_v38  ;;  %298 = vst.msk [vmem:[#allocation2 + $0x8] sm:$0x3] %vm293_vm3, %v275_v38  ;;  %v251_v43 = vcombine.high %v241_v39, %v241_v39  ;;  %v258_v44 = vrot.slane %v241_v39, %v2513_v10  ;;  %v2647_v37 = vld [vmem:[#allocation11 + $0x8] sm:$0xff]  ;;  %v2651_v38 = vld [vmem:[#allocation11] sm:$0xff] }
 0x112   :  { %v284_v45 = vcombine.high %v282_v41, %v282_v41  ;;  %299 = vst.msk [vmem:[#allocation2 + $0xa] sm:$0x3] %vm293_vm3, %v283_v42  ;;  %300 = vst.msk [vmem:[#allocation2 + $0xc] sm:$0x3] %vm293_vm3, %v282_v41  ;;  %v265_v46 = vrot.slane %v251_v43, %v2513_v10  ;;  %v266_v47 = vcombine.high %v258_v44, %v258_v44 }
 0x113   :  { %294 = vst.msk [vmem:[#allocation2] sm:$0x3] %vm293_vm3, %v258_v44 }
 0x114   :  { %301 = vst.msk [vmem:[#allocation2 + $0xe] sm:$0x3] %vm293_vm3, %v284_v45  ;;  %v267_v48 = vcombine.high %v265_v46, %v265_v46  ;;  %295 = vst.msk [vmem:[#allocation2 + $0x2] sm:$0x3] %vm293_vm3, %v266_v47 }
 0x115   :  { %296 = vst.msk [vmem:[#allocation2 + $0x4] sm:$0x3] %vm293_vm3, %v265_v46 }
 0x116   :  { %297 = vst.msk [vmem:[#allocation2 + $0x6] sm:$0x3] %vm293_vm3, %v267_v48 }
 0x117   :  { %v615_v5 = vld [vmem:[#allocation2 + $0x8] sm:$0x3] }
 0x119   :  { %v693_v12 = vld [vmem:[#allocation2 + $0xa] sm:$0x3]  ;;  %v771_v26 = vld [vmem:[#allocation2 + $0xc] sm:$0x3] }
 0x11a   :  { %v302_v49 = vld [vmem:[#allocation2] sm:$0x3] }
 0x11b   :  { %v377_v50 = vadd.f32 %v373_v35, %v302_v49  ;;  %v381_v52 = vld [vmem:[#allocation2 + $0x2] sm:$0x3]  ;;  %v2641_v35 = vld [vmem:[#allocation11 + $0x18] sm:$0xff] }
 0x11c   :  { %v459_v57 = vld [vmem:[#allocation2 + $0x4] sm:$0x3]  ;;  %v849_v39 = vld [vmem:[#allocation2 + $0xe] sm:$0x3] }
 0x11d   :  { %2243 = vtanh.f32 %v377_v50  ;;  %v537_v62 = vld [vmem:[#allocation2 + $0x6] sm:$0x3] }
 0x12a   :  { %v2244_v51 = vpop.eup %2243 }
 0x12b   :  { %379 = vst.msk [vmem:[#allocation2] sm:$0x3] %vm293_vm3, %v2244_v51  ;;  %2062 = vmatmul.mubr.msk.f32.vlgmr.msra.gmra.mxu0 %vm303_vm4, %v2244_v51 }
 0x12c   :  { %2076 = vmatpush3.msra.mxu0 %v2515_v21  ;;  %2083 = vmatprep.mubr.msk.f32.mxu0 %vm2424_vm0, %v2423_v4 }
 0x12d   :  { %2077 = vmatprep.subr.mxu0 %v2423_v4 }
 0x12e   :  { %2078 = vmatpush3.msra.mxu0 %v2517_v22 }
 0x12f   :  { %2079 = vmatprep.subr.mxu0 %v2423_v4 }
 0x130   :  { %2080 = vmatpush3.msra.mxu0 %v2524_v27 }
 0x131   :  { %2081 = vmatprep.subr.mxu0 %v2423_v4 }
 0x132   :  { %2082 = vmatpush3.msra.mxu0 %v2530_v30  ;;  %v935_v20 = vld [vmem:[#allocation2] sm:$0x3] }
 0x133   :  { %2097 = vmatprep.subr.mxu0 %v2423_v4 }
 0x1eb   :  { %v451_v53 = vpop.f32.mrf.mxu0 }
 0x1ec   :  { %v455_v54 = vadd.f32 %v451_v53, %v381_v52 }
 0x1ed   :  { %v2063_v55 = vpop.f32.mrf.mxu0 }
 0x1ee   :  { %2245 = vtanh.f32 %v455_v54  ;;  %v1925_v55 = vld [vmem:[%s2792_s6] ss:$0 sm:$0xff] }
 0x1fb   :  { %v2246_v56 = vpop.eup %2245 }
 0x1fc   :  { %457 = vst.msk [vmem:[#allocation2 + $0x2] sm:$0x3] %vm293_vm3, %v2246_v56  ;;  %2073 = vmatmul.mubr.msk.f32.vlgmr.msra.gmra.mxu1 %vm303_vm4, %v2246_v56 }
 0x1fd   :  { %2087 = vmatpush3.msra.mxu1 %v2515_v21  ;;  %2094 = vmatprep.mubr.msk.f32.mxu1 %vm2424_vm0, %v2423_v4 }
 0x1fe   :  { %2088 = vmatprep.subr.mxu1 %v2423_v4 }
 0x1ff   :  { %2089 = vmatpush3.msra.mxu1 %v2517_v22 }
 0x200   :  { %2090 = vmatprep.subr.mxu1 %v2423_v4 }
 0x201   :  { %2091 = vmatpush3.msra.mxu1 %v2524_v27 }
 0x202   :  { %2092 = vmatprep.subr.mxu1 %v2423_v4 }
 0x203   :  { %2093 = vmatpush3.msra.mxu1 %v2530_v30  ;;  %v936_v17 = vld [vmem:[#allocation2 + $0x2] sm:$0x3] }
 0x204   :  { %2108 = vmatprep.subr.mxu1 %v2423_v4 }
 0x2bc   :  { %v529_v58 = vpop.f32.mrf.mxu1 }
 0x2bd   :  { %v533_v59 = vadd.f32 %v529_v58, %v459_v57 }
 0x2be   :  { %v2074_v60 = vpop.f32.mrf.mxu1 }
 0x2bf   :  { %2247 = vtanh.f32 %v533_v59 }
 0x2cc   :  { %v2248_v61 = vpop.eup %2247 }
 0x2cd   :  { %535 = vst.msk [vmem:[#allocation2 + $0x4] sm:$0x3] %vm293_vm3, %v2248_v61  ;;  %2084 = vmatmul.mubr.msk.f32.vlgmr.msra.gmra.mxu0 %vm303_vm4, %v2248_v61 }
 0x2ce   :  { %2098 = vmatpush3.msra.mxu0 %v2515_v21  ;;  %2105 = vmatprep.mubr.msk.f32.mxu0 %vm2424_vm0, %v2423_v4 }
 0x2cf   :  { %2099 = vmatprep.subr.mxu0 %v2423_v4 }
 0x2d0   :  { %2100 = vmatpush3.msra.mxu0 %v2517_v22 }
 0x2d1   :  { %2101 = vmatprep.subr.mxu0 %v2423_v4 }
 0x2d2   :  { %2102 = vmatpush3.msra.mxu0 %v2524_v27 }
 0x2d3   :  { %2103 = vmatprep.subr.mxu0 %v2423_v4 }
 0x2d4   :  { %2104 = vmatpush3.msra.mxu0 %v2530_v30  ;;  %v937_v18 = vld [vmem:[#allocation2 + $0x4] sm:$0x3] }
 0x2d5   :  { %2119 = vmatprep.subr.mxu0 %v2423_v4 }
 0x38d   :  { %v607_v63 = vpop.f32.mrf.mxu0 }
 0x38e   :  { %v611_v0 = vadd.f32 %v607_v63, %v537_v62 }
 0x38f   :  { %v2085_v2 = vpop.f32.mrf.mxu0 }
 0x390   :  { %2249 = vtanh.f32 %v611_v0 }
 0x39d   :  { %v2250_v3 = vpop.eup %2249 }
 0x39e   :  { %613 = vst.msk [vmem:[#allocation2 + $0x6] sm:$0x3] %vm293_vm3, %v2250_v3  ;;  %2095 = vmatmul.mubr.msk.f32.vlgmr.msra.gmra.mxu1 %vm303_vm4, %v2250_v3 }
 0x39f   :  { %2109 = vmatpush3.msra.mxu1 %v2515_v21  ;;  %2116 = vmatprep.mubr.msk.f32.mxu1 %vm2424_vm0, %v2423_v4 }
 0x3a0   :  { %2110 = vmatprep.subr.mxu1 %v2423_v4 }
 0x3a1   :  { %2111 = vmatpush3.msra.mxu1 %v2517_v22 }
 0x3a2   :  { %2112 = vmatprep.subr.mxu1 %v2423_v4 }
 0x3a3   :  { %2113 = vmatpush3.msra.mxu1 %v2524_v27 }
 0x3a4   :  { %2114 = vmatprep.subr.mxu1 %v2423_v4 }
 0x3a5   :  { %2115 = vmatpush3.msra.mxu1 %v2530_v30  ;;  %v938_v16 = vld [vmem:[#allocation2 + $0x6] sm:$0x3] }
 0x3a6   :  { %v958_v19 = vcombine.low %v937_v18, %v938_v16  ;;  %2130 = vmatprep.subr.mxu1 %v929_v31 }
 0x45e   :  { %v685_v7 = vpop.f32.mrf.mxu1 }
 0x45f   :  { %v689_v8 = vadd.f32 %v685_v7, %v615_v5 }
 0x460   :  { %v2096_v9 = vpop.f32.mrf.mxu1 }
 0x461   :  { %2251 = vtanh.f32 %v689_v8 }
 0x46e   :  { %v2252_v11 = vpop.eup %2251 }
 0x46f   :  { %691 = vst.msk [vmem:[#allocation2 + $0x8] sm:$0x3] %vm293_vm3, %v2252_v11  ;;  %2106 = vmatmul.mubr.msk.f32.vlgmr.msra.gmra.mxu0 %vm303_vm4, %v2252_v11 }
 0x470   :  { %2120 = vmatpush3.msra.mxu0 %v2515_v21  ;;  %2127 = vmatprep.mubr.msk.f32.mxu0 %vm2424_vm0, %v2423_v4  ;;  %v957_v21 = vcombine.low %v935_v20, %v936_v17 }
 0x471   :  { %2121 = vmatprep.subr.mxu0 %v2423_v4 }
 0x472   :  { %2122 = vmatpush3.msra.mxu0 %v2517_v22  ;;  %v972_v22 = vrot.slane %v958_v19, %v2513_v10  ;;  %v965_v23 = vrot.slane %v957_v21, %v2513_v10 }
 0x473   :  { %2123 = vmatprep.subr.mxu0 %v2423_v4 }
 0x474   :  { %2124 = vmatpush3.msra.mxu0 %v2524_v27  ;;  %v973_v25 = vcombine.low %v965_v23, %v972_v22 }
 0x475   :  { %2125 = vmatprep.subr.mxu0 %v2423_v4 }
 0x476   :  { %2126 = vmatpush3.msra.mxu0 %v2530_v30  ;;  %v939_v45 = vld [vmem:[#allocation2 + $0x8] sm:$0x3] }
 0x477   :  { %2141 = vmatprep.subr.mxu0 %v2423_v4 }
 0x52f   :  { %v763_v13 = vpop.f32.mrf.mxu0 }
 0x530   :  { %v767_v14 = vadd.f32 %v763_v13, %v693_v12 }
 0x531   :  { %v2107_v15 = vpop.f32.mrf.mxu0 }
 0x532   :  { %2253 = vtanh.f32 %v767_v14 }
 0x53f   :  { %v2254_v24 = vpop.eup %2253 }
 0x540   :  { %769 = vst.msk [vmem:[#allocation2 + $0xa] sm:$0x3] %vm293_vm3, %v2254_v24  ;;  %2117 = vmatmul.mubr.msk.f32.vlgmr.msra.gmra.mxu1 %vm303_vm4, %v2254_v24 }
 0x541   :  { %2138 = vmatprep.mubr.msk.f32.mxu1 %vm303_vm4, %v973_v25  ;;  %2131 = vmatpush3.msra.mxu1 %v929_v31 }
 0x542   :  { %2132 = vmatprep.subr.mxu1 %v928_v32 }
 0x543   :  { %2133 = vmatpush3.msra.mxu1 %v928_v32 }
 0x544   :  { %2134 = vmatprep.subr.mxu1 %v927_v33 }
 0x545   :  { %2135 = vmatpush3.msra.mxu1 %v927_v33 }
 0x546   :  { %2136 = vmatprep.subr.mxu1 %v926_v34 }
 0x547   :  { %2137 = vmatpush3.msra.mxu1 %v926_v34  ;;  %v940_v44 = vld [vmem:[#allocation2 + $0xa] sm:$0x3] }
 0x548   :  { %2152 = vmatprep.subr.mxu1 %v2423_v4  ;;  %v974_v46 = vcombine.low %v939_v45, %v940_v44 }
 0x54a   :  { %v982_v50 = vrot.slane %v974_v46, %v2513_v10 }
 0x600   :  { %v841_v27 = vpop.f32.mrf.mxu1 }
 0x601   :  { %v845_v28 = vadd.f32 %v841_v27, %v771_v26 }
 0x602   :  { %v2118_v29 = vpop.f32.mrf.mxu1 }
 0x603   :  { %2255 = vtanh.f32 %v845_v28 }
 0x610   :  { %v2256_v30 = vpop.eup %2255 }
 0x611   :  { %847 = vst.msk [vmem:[#allocation2 + $0xc] sm:$0x3] %vm293_vm3, %v2256_v30  ;;  %2128 = vmatmul.mubr.msk.f32.vlgmr.msra.gmra.mxu0 %vm303_vm4, %v2256_v30 }
 0x612   :  { %2149 = vmatprep.mubr.msk.f32.mxu0 %vm2424_vm0, %v2423_v4  ;;  %2142 = vmatpush3.msra.mxu0 %v2641_v35 }
 0x613   :  { %2143 = vmatprep.subr.mxu0 %v2423_v4 }
 0x614   :  { %2144 = vmatpush3.msra.mxu0 %v2643_v36 }
 0x615   :  { %2145 = vmatprep.subr.mxu0 %v2423_v4 }
 0x616   :  { %2146 = vmatpush3.msra.mxu0 %v2647_v37 }
 0x617   :  { %2147 = vmatprep.subr.mxu0 %v2423_v4 }
 0x618   :  { %2148 = vmatpush3.msra.mxu0 %v2651_v38  ;;  %v941_v47 = vld [vmem:[#allocation2 + $0xc] sm:$0x3] }
 0x619   :  { %2150 = vmatmul.mubr.f32.vlgmr.msra.gmra.mxu0 %v2423_v4  ;;  %2163 = vmatprep.subr.mxu0 %v2423_v4 }
 0x61a   :  { %2164 = vmatpush3.msra.mxu0 %v2641_v35  ;;  %2171 = vmatprep.mubr.msk.f32.mxu0 %vm2424_vm0, %v2423_v4 }
 0x61b   :  { %2165 = vmatprep.subr.mxu0 %v2423_v4 }
 0x61c   :  { %2166 = vmatpush3.msra.mxu0 %v2643_v36 }
 0x61d   :  { %2167 = vmatprep.subr.mxu0 %v2423_v4 }
 0x61e   :  { %2168 = vmatpush3.msra.mxu0 %v2647_v37 }
 0x61f   :  { %2169 = vmatprep.subr.mxu0 %v2423_v4 }
 0x620   :  { %2170 = vmatpush3.msra.mxu0 %v2651_v38 }
 0x621   :  { %2185 = vmatprep.subr.mxu0 %v2423_v4 }
 0x6d1   :  { %v919_v40 = vpop.f32.mrf.mxu0 }
 0x6d2   :  { %v923_v41 = vadd.f32 %v919_v40, %v849_v39 }
 0x6d3   :  { %v2129_v42 = vpop.f32.mrf.mxu0 }
 0x6d4   :  { %2257 = vtanh.f32 %v923_v41 }
 0x6d9   :  { %v1189_v53 = vpop.f32.mrf.mxu0 }
 0x6db   :  { %v2151_v54 = vpop.f32.mrf.mxu0 }
 0x6e1   :  { %v2258_v43 = vpop.eup %2257 }
 0x6e2   :  { %925 = vst.msk [vmem:[#allocation2 + $0xe] sm:$0x3] %vm293_vm3, %v2258_v43 }
 0x6e9   :  { %v942_v48 = vld [vmem:[#allocation2 + $0xe] sm:$0x3] }
 0x6ea   :  { %v975_v49 = vcombine.low %v941_v47, %v942_v48 }
 0x6ec   :  { %v989_v51 = vrot.slane %v975_v49, %v2513_v10 }
 0x6ee   :  { %v990_v52 = vcombine.low %v982_v50, %v989_v51 }
 0x6f0   :  { %2139 = vmatmul.mubr.msk.f32.vlgmr.msra.gmra.mxu1 %vm303_vm4, %v990_v52 }
 0x6f1   :  { %2153 = vmatpush3.msra.mxu1 %v2641_v35  ;;  %2160 = vmatprep.mubr.msk.f32.mxu1 %vm2424_vm0, %v2423_v4 }
 0x6f2   :  { %2154 = vmatprep.subr.mxu1 %v2423_v4 }
 0x6f3   :  { %2155 = vmatpush3.msra.mxu1 %v2643_v36 }
 0x6f4   :  { %2156 = vmatprep.subr.mxu1 %v2423_v4 }
 0x6f5   :  { %2157 = vmatpush3.msra.mxu1 %v2647_v37 }
 0x6f6   :  { %2158 = vmatprep.subr.mxu1 %v2423_v4 }
 0x6f7   :  { %2159 = vmatpush3.msra.mxu1 %v2651_v38 }
 0x6f8   :  { %2174 = vmatprep.subr.mxu1 %v2423_v4 }
 0x7b0   :  { %v2140_v56 = vpop.f32.mrf.mxu1 }
 0x7b1   :  { %v1067_v57 = vadd.f32 %v2140_v56, %v1925_v55 }
 0x7b2   :  { %v1061_v58 = vpop.f32.mrf.mxu1 }
 0x7b3   :  { %v1089_v59 = vcombine.high %v1067_v57, %v1067_v57  ;;  %v1096_v60 = vrot.slane %v1067_v57, %v2513_v10  ;;  %v1062_v61 = vadd.f32 %v1925_v55, %v1061_v58  ;;  %v2425_v55 = vmov 0  }
 0x7b4   :  { %2242 = vset.pattern.permute.xlu0 %v2425_v55 }
 0x7b5   :  { %v1103_v62 = vrot.slane %v1089_v59, %v2513_v10  ;;  %v1104_v63 = vcombine.high %v1096_v60, %v1096_v60  ;;  %1118 = vst.msk [vmem:[#allocation2 + $0x8] sm:$0x3] %vm293_vm3, %v1096_v60  ;;  %v1072_v0 = vcombine.high %v1062_v61, %v1062_v61  ;;  %v1079_v2 = vrot.slane %v1062_v61, %v2513_v10 }
 0x7b7   :  { %v1105_v3 = vcombine.high %v1103_v62, %v1103_v62  ;;  %1119 = vst.msk [vmem:[#allocation2 + $0xa] sm:$0x3] %vm293_vm3, %v1104_v63  ;;  %1120 = vst.msk [vmem:[#allocation2 + $0xc] sm:$0x3] %vm293_vm3, %v1103_v62  ;;  %v1086_v5 = vrot.slane %v1072_v0, %v2513_v10  ;;  %v1087_v7 = vcombine.high %v1079_v2, %v1079_v2  ;;  %v2708_v10 = vld [vmem:[%s2793_s7] ss:$0 sm:$0xff] }
 0x7b8   :  { %1114 = vst.msk [vmem:[#allocation2] sm:$0x3] %vm293_vm3, %v1079_v2  ;;  %v1936_v0 = vld [vmem:[#allocation3] ss:$0 sm:$0xff] }
 0x7b9   :  { %1121 = vst.msk [vmem:[#allocation2 + $0xe] sm:$0x3] %vm293_vm3, %v1105_v3  ;;  %v1088_v8 = vcombine.high %v1086_v5, %v1086_v5  ;;  %1115 = vst.msk [vmem:[#allocation2 + $0x2] sm:$0x3] %vm293_vm3, %v1087_v7 }
 0x7ba   :  { %1116 = vst.msk [vmem:[#allocation2 + $0x4] sm:$0x3] %vm293_vm3, %v1086_v5 }
 0x7bb   :  { %1117 = vst.msk [vmem:[#allocation2 + $0x6] sm:$0x3] %vm293_vm3, %v1088_v8 }
 0x7bc   :  { %v1427_v44 = vld [vmem:[#allocation2 + $0x8] sm:$0x3] }
 0x7be   :  { %v1504_v51 = vld [vmem:[#allocation2 + $0xa] sm:$0x3]  ;;  %v1581_v56 = vld [vmem:[#allocation2 + $0xc] sm:$0x3] }
 0x7bf   :  { %v1122_v9 = vld [vmem:[#allocation2] sm:$0x3] }
 0x7c0   :  { %v1193_v11 = vadd.f32 %v1189_v53, %v1122_v9  ;;  %v1196_v16 = vld [vmem:[#allocation2 + $0x2] sm:$0x3]  ;;  %v1658_v2 = vld [vmem:[#allocation2 + $0xe] sm:$0x3] }
 0x7c1   :  { %v1273_v24 = vld [vmem:[#allocation2 + $0x4] sm:$0x3] }
 0x7c2   :  { %2259 = vtanh.f32 %v1193_v11  ;;  %v1350_v32 = vld [vmem:[#allocation2 + $0x6] sm:$0x3] }
 0x7cf   :  { %v2260_v12 = vpop.eup %2259 }
 0x7d0   :  { %1195 = vst.msk [vmem:[#allocation2] sm:$0x3] %vm293_vm3, %v2260_v12  ;;  %2161 = vmatmul.mubr.msk.f32.vlgmr.msra.gmra.mxu1 %vm303_vm4, %v2260_v12 }
 0x7d1   :  { %2175 = vmatpush3.msra.mxu1 %v2641_v35  ;;  %2182 = vmatprep.mubr.msk.f32.mxu1 %vm2424_vm0, %v2423_v4 }
 0x7d2   :  { %2176 = vmatprep.subr.mxu1 %v2423_v4 }
 0x7d3   :  { %2177 = vmatpush3.msra.mxu1 %v2643_v36 }
 0x7d4   :  { %2178 = vmatprep.subr.mxu1 %v2423_v4 }
 0x7d5   :  { %2179 = vmatpush3.msra.mxu1 %v2647_v37 }
 0x7d6   :  { %2180 = vmatprep.subr.mxu1 %v2423_v4 }
 0x7d7   :  { %v1735_v13 = vld [vmem:[#allocation2] sm:$0x3]  ;;  %2181 = vmatpush3.msra.mxu1 %v2651_v38 }
 0x7d8   :  { %v1750_v14 = vmul.f32 %v2708_v10, %v1735_v13  ;;  %2196 = vmatprep.subr.mxu1 %v2423_v4 }
 0x7da   :  { %v1758_v15 = vsel %vm293_vm3, %v1750_v14, 0.0 }
 0x7db   :  { %1759 = vadd.xlane.f32.xlu0 %v1758_v15 }
 0x864   :  { %v1760_v13 = vpop.xlane.xlu0 %1759 }
 0x890   :  { %v1266_v17 = vpop.f32.mrf.mxu1 }
 0x891   :  { %v1270_v18 = vadd.f32 %v1266_v17, %v1196_v16 }
 0x892   :  { %v2162_v19 = vpop.f32.mrf.mxu1 }
 0x893   :  { %2261 = vtanh.f32 %v1270_v18 }
 0x8a0   :  { %v2262_v20 = vpop.eup %2261 }
 0x8a1   :  { %1272 = vst.msk [vmem:[#allocation2 + $0x2] sm:$0x3] %vm293_vm3, %v2262_v20  ;;  %2172 = vmatmul.mubr.msk.f32.vlgmr.msra.gmra.mxu0 %vm303_vm4, %v2262_v20 }
 0x8a2   :  { %2186 = vmatpush3.msra.mxu0 %v2641_v35  ;;  %2193 = vmatprep.mubr.msk.f32.mxu0 %vm2424_vm0, %v2423_v4 }
 0x8a3   :  { %2187 = vmatprep.subr.mxu0 %v2423_v4 }
 0x8a4   :  { %2188 = vmatpush3.msra.mxu0 %v2643_v36 }
 0x8a5   :  { %2189 = vmatprep.subr.mxu0 %v2423_v4 }
 0x8a6   :  { %2190 = vmatpush3.msra.mxu0 %v2647_v37 }
 0x8a7   :  { %2191 = vmatprep.subr.mxu0 %v2423_v4 }
 0x8a8   :  { %v1736_v21 = vld [vmem:[#allocation2 + $0x2] sm:$0x3]  ;;  %2192 = vmatpush3.msra.mxu0 %v2651_v38 }
 0x8a9   :  { %v1751_v22 = vmul.f32 %v2708_v10, %v1736_v21  ;;  %2207 = vmatprep.subr.mxu0 %v2423_v4 }
 0x8ab   :  { %v1761_v23 = vsel %vm293_vm3, %v1751_v22, 0.0 }
 0x8ac   :  { %1762 = vadd.xlane.f32.xlu0 %v1761_v23 }
 0x935   :  { %v1763_v14 = vpop.xlane.xlu0 %1762 }
 0x961   :  { %v1343_v25 = vpop.f32.mrf.mxu0 }
 0x962   :  { %v1347_v26 = vadd.f32 %v1343_v25, %v1273_v24 }
 0x963   :  { %v2173_v27 = vpop.f32.mrf.mxu0 }
 0x964   :  { %2263 = vtanh.f32 %v1347_v26 }
 0x971   :  { %v2264_v28 = vpop.eup %2263 }
 0x972   :  { %1349 = vst.msk [vmem:[#allocation2 + $0x4] sm:$0x3] %vm293_vm3, %v2264_v28  ;;  %2183 = vmatmul.mubr.msk.f32.vlgmr.msra.gmra.mxu1 %vm303_vm4, %v2264_v28 }
 0x973   :  { %2197 = vmatpush3.msra.mxu1 %v2641_v35  ;;  %2204 = vmatprep.mubr.msk.f32.mxu1 %vm2424_vm0, %v2423_v4 }
 0x974   :  { %2198 = vmatprep.subr.mxu1 %v2423_v4 }
 0x975   :  { %2199 = vmatpush3.msra.mxu1 %v2643_v36 }
 0x976   :  { %2200 = vmatprep.subr.mxu1 %v2423_v4 }
 0x977   :  { %2201 = vmatpush3.msra.mxu1 %v2647_v37 }
 0x978   :  { %2202 = vmatprep.subr.mxu1 %v2423_v4 }
 0x979   :  { %v1737_v29 = vld [vmem:[#allocation2 + $0x4] sm:$0x3]  ;;  %2203 = vmatpush3.msra.mxu1 %v2651_v38 }
 0x97a   :  { %v1752_v30 = vmul.f32 %v2708_v10, %v1737_v29  ;;  %2218 = vmatprep.subr.mxu1 %v2423_v4 }
 0x97c   :  { %v1764_v31 = vsel %vm293_vm3, %v1752_v30, 0.0 }
 0x97d   :  { %1765 = vadd.xlane.f32.xlu1 %v1764_v31 }
 0xa06   :  { %v1766_v20 = vpop.xlane.xlu1 %1765 }
 0xa32   :  { %v1420_v33 = vpop.f32.mrf.mxu1 }
 0xa33   :  { %v1424_v34 = vadd.f32 %v1420_v33, %v1350_v32 }
 0xa34   :  { %v2184_v39 = vpop.f32.mrf.mxu1 }
 0xa35   :  { %2265 = vtanh.f32 %v1424_v34 }
 0xa42   :  { %v2266_v40 = vpop.eup %2265 }
 0xa43   :  { %1426 = vst.msk [vmem:[#allocation2 + $0x6] sm:$0x3] %vm293_vm3, %v2266_v40  ;;  %2194 = vmatmul.mubr.msk.f32.vlgmr.msra.gmra.mxu0 %vm303_vm4, %v2266_v40 }
 0xa44   :  { %2208 = vmatpush3.msra.mxu0 %v2641_v35  ;;  %2215 = vmatprep.mubr.msk.f32.mxu0 %vm2424_vm0, %v2423_v4 }
 0xa45   :  { %2209 = vmatprep.subr.mxu0 %v2423_v4 }
 0xa46   :  { %2210 = vmatpush3.msra.mxu0 %v2643_v36 }
 0xa47   :  { %2211 = vmatprep.subr.mxu0 %v2423_v4 }
 0xa48   :  { %2212 = vmatpush3.msra.mxu0 %v2647_v37 }
 0xa49   :  { %2213 = vmatprep.subr.mxu0 %v2423_v4 }
 0xa4a   :  { %v1738_v41 = vld [vmem:[#allocation2 + $0x6] sm:$0x3]  ;;  %2214 = vmatpush3.msra.mxu0 %v2651_v38 }
 0xa4b   :  { %v1753_v42 = vmul.f32 %v2708_v10, %v1738_v41 }
 0xa4d   :  { %v1767_v43 = vsel %vm293_vm3, %v1753_v42, 0.0 }
 0xa4e   :  { %1768 = vadd.xlane.f32.xlu1 %v1767_v43 }
 0xad7   :  { %v1769_v24 = vpop.xlane.xlu1 %1768 }
 0xb03   :  { %v1497_v45 = vpop.f32.mrf.mxu0 }
 0xb04   :  { %v1501_v46 = vadd.f32 %v1497_v45, %v1427_v44 }
 0xb05   :  { %v2195_v47 = vpop.f32.mrf.mxu0 }
 0xb06   :  { %2267 = vtanh.f32 %v1501_v46 }
 0xb13   :  { %v2268_v48 = vpop.eup %2267 }
 0xb14   :  { %1503 = vst.msk [vmem:[#allocation2 + $0x8] sm:$0x3] %vm293_vm3, %v2268_v48  ;;  %2205 = vmatmul.mubr.msk.f32.vlgmr.msra.gmra.mxu1 %vm303_vm4, %v2268_v48 }
 0xb15   :  { %2219 = vmatpush3.msra.mxu1 %v2641_v35  ;;  %2226 = vmatprep.mubr.msk.f32.mxu1 %vm2424_vm0, %v2423_v4 }
 0xb16   :  { %2220 = vmatprep.subr.mxu1 %v2423_v4 }
 0xb17   :  { %2221 = vmatpush3.msra.mxu1 %v2643_v36 }
 0xb18   :  { %2222 = vmatprep.subr.mxu1 %v2423_v4 }
 0xb19   :  { %2223 = vmatpush3.msra.mxu1 %v2647_v37 }
 0xb1a   :  { %2224 = vmatprep.subr.mxu1 %v2423_v4 }
 0xb1b   :  { %v1739_v49 = vld [vmem:[#allocation2 + $0x8] sm:$0x3]  ;;  %2225 = vmatpush3.msra.mxu1 %v2651_v38 }
 0xb1c   :  { %v1754_v50 = vmul.f32 %v2708_v10, %v1739_v49 }
 0xb1e   :  { %v1770_v35 = vsel %vm293_vm3, %v1754_v50, 0.0 }
 0xb1f   :  { %1771 = vadd.xlane.f32.xlu0 %v1770_v35 }
 0xba8   :  { %v1772_v15 = vpop.xlane.xlu0 %1771 }
 0xbd4   :  { %v1574_v52 = vpop.f32.mrf.mxu1 }
 0xbd5   :  { %v1578_v53 = vadd.f32 %v1574_v52, %v1504_v51  ;;  %v1857_v51 = vand.u32 127, %v136_v1 }
 0xbd6   :  { %v2206_v54 = vpop.f32.mrf.mxu1 }
 0xbd7   :  { %2269 = vtanh.f32 %v1578_v53 }
 0xbe4   :  { %v2270_v36 = vpop.eup %2269 }
 0xbe5   :  { %1580 = vst.msk [vmem:[#allocation2 + $0xa] sm:$0x3] %vm293_vm3, %v2270_v36  ;;  %2216 = vmatmul.mubr.msk.f32.vlgmr.msra.gmra.mxu0 %vm303_vm4, %v2270_v36  ;;  %v1860_v36 = vsub.s32 %v1857_v51, %v2510_v6 }
 0xbec   :  { %v1740_v37 = vld [vmem:[#allocation2 + $0xa] sm:$0x3] }
 0xbed   :  { %v1755_v4 = vmul.f32 %v2708_v10, %v1740_v37 }
 0xbef   :  { %v1773_v38 = vsel %vm293_vm3, %v1755_v4, 0.0 }
 0xbf0   :  { %1774 = vadd.xlane.f32.xlu1 %v1773_v38 }
 0xc79   :  { %v1775_v28 = vpop.xlane.xlu1 %1774 }
 0xca5   :  { %v1651_v57 = vpop.f32.mrf.mxu0 }
 0xca6   :  { %v1655_v58 = vadd.f32 %v1651_v57, %v1581_v56 }
 0xca7   :  { %v2217_v59 = vpop.f32.mrf.mxu0 }
 0xca8   :  { %2271 = vtanh.f32 %v1655_v58 }
 0xcb5   :  { %v2272_v60 = vpop.eup %2271 }
 0xcb6   :  { %1657 = vst.msk [vmem:[#allocation2 + $0xc] sm:$0x3] %vm293_vm3, %v2272_v60  ;;  %2227 = vmatmul.mubr.msk.f32.vlgmr.msra.gmra.mxu1 %vm303_vm4, %v2272_v60 }
 0xcbd   :  { %v1741_v61 = vld [vmem:[#allocation2 + $0xc] sm:$0x3] }
 0xcbe   :  { %v1756_v62 = vmul.f32 %v2708_v10, %v1741_v61 }
 0xcc0   :  { %v1776_v63 = vsel %vm293_vm3, %v1756_v62, 0.0 }
 0xcc1   :  { %1777 = vadd.xlane.f32.xlu0 %v1776_v63 }
 0xcd7   :  { %1789 = vperm.xlu0 %2242, %v1936_v0  }
 0xd4a   :  { %v1778_v16 = vpop.xlane.xlu0 %1777 }
 0xd52   :  { %v1790_v17 = vpop.permute.xlu0 %1789 }
 0xd53   :  { %v1792_v18 = vadd.f32 %v1790_v17, %v1760_v13  ;;  %v1793_v19 = vadd.f32 %v1790_v17, %v1763_v14  ;;  %v1794_v21 = vadd.f32 %v1790_v17, %v1766_v20  ;;  %v1795_v26 = vadd.f32 %v1790_v17, %v1769_v24 }
 0xd54   :  { %v1797_v29 = vadd.f32 %v1790_v17, %v1775_v28  ;;  %v1798_v31 = vadd.f32 %v1790_v17, %v1778_v16 }
 0xd55   :  { %v1937_v22 = vmul.f32 -1.442695, %v1792_v18  ;;  %v1938_v23 = vmul.f32 -1.442695, %v1793_v19  ;;  %v1939_v25 = vmul.f32 -1.442695, %v1794_v21 }
 0xd56   :  { %v1940_v27 = vmul.f32 -1.442695, %v1795_v26  ;;  %v1942_v32 = vmul.f32 -1.442695, %v1797_v29  ;;  %v1943_v39 = vmul.f32 -1.442695, %v1798_v31 }
 0xd76   :  { %v1728_v3 = vpop.f32.mrf.mxu1 }
 0xd77   :  { %v1732_v5 = vadd.f32 %v1728_v3, %v1658_v2 }
 0xd78   :  { %v2228_v7 = vpop.f32.mrf.mxu1 }
 0xd79   :  { %2273 = vtanh.f32 %v1732_v5 }
 0xd7a   :  { %2275 = vpow2.f32 %v1937_v22 }
 0xd7b   :  { %2277 = vpow2.f32 %v1938_v23 }
 0xd7c   :  { %2279 = vpow2.f32 %v1939_v25 }
 0xd7d   :  { %2281 = vpow2.f32 %v1940_v27 }
 0xd86   :  { %v2274_v8 = vpop.eup %2273 }
 0xd87   :  { %1734 = vst.msk [vmem:[#allocation2 + $0xe] sm:$0x3] %vm293_vm3, %v2274_v8  ;;  %v2276_v33 = vpop.eup %2275 }
 0xd88   :  { %v2278_v34 = vpop.eup %2277  ;;  %v1824_v40 = vadd.f32 1.0, %v2276_v33 }
 0xd89   :  { %v2280_v41 = vpop.eup %2279  ;;  %v1825_v42 = vadd.f32 1.0, %v2278_v34 }
 0xd8a   :  { %v1826_v43 = vadd.f32 1.0, %v2280_v41  ;;  %v2282_v46 = vpop.eup %2281 }
 0xd8b   :  { %v1827_v49 = vadd.f32 1.0, %v2282_v46 }
 0xd8e   :  { %v1742_v9 = vld [vmem:[#allocation2 + $0xe] sm:$0x3] }
 0xd8f   :  { %v1757_v11 = vmul.f32 %v2708_v10, %v1742_v9  ;;  %v1796_v10 = vadd.f32 %v1790_v17, %v1772_v15 }
 0xd91   :  { %v1779_v12 = vsel %vm293_vm3, %v1757_v11, 0.0  ;;  %v1941_v30 = vmul.f32 -1.442695, %v1796_v10 }
 0xd92   :  { %1780 = vadd.xlane.f32.xlu1 %v1779_v12 }
 0xd93   :  { %2283 = vpow2.f32 %v1941_v30 }
 0xd94   :  { %2285 = vpow2.f32 %v1942_v32 }
 0xd95   :  { %2287 = vpow2.f32 %v1943_v39 }
 0xd96   :  { %2289 = vrcp.f32 %v1824_v40 }
 0xd97   :  { %2291 = vrcp.f32 %v1825_v42 }
 0xd98   :  { %2293 = vrcp.f32 %v1826_v43 }
 0xda0   :  { %v2284_v48 = vpop.eup %2283 }
 0xda1   :  { %v2286_v50 = vpop.eup %2285  ;;  %v1828_v35 = vadd.f32 1.0, %v2284_v48 }
 0xda2   :  { %v2288_v52 = vpop.eup %2287  ;;  %v1829_v53 = vadd.f32 1.0, %v2286_v50 }
 0xda3   :  { %v2290_v54 = vpop.eup %2289  ;;  %v1830_v4 = vadd.f32 1.0, %v2288_v52 }
 0xda4   :  { %v2292_v37 = vpop.eup %2291  ;;  %v1861_v55 = vrot.slane %v2290_v54, %v1860_v36 }
 0xda5   :  { %v2294_v38 = vpop.eup %2293  ;;  %v1865_v56 = vrot.slane %v2292_v37, %v1860_v36 }
 0xda6   :  { %v1869_v59 = vrot.slane %v2294_v38, %v1860_v36 }
 0xda7   :  { %v1891_v60 = vsel %vm1890_vm5, %v1865_v56, %v1861_v55 }
 0xda8   :  { %v1893_v61 = vsel %vm1892_vm6, %v1869_v59, %v1891_v60 }
 0xe1b   :  { %v1781_v44 = vpop.xlane.xlu1 %1780 }
 0xe1c   :  { %v1799_v45 = vadd.f32 %v1790_v17, %v1781_v44 }
 0xe1e   :  { %v1944_v47 = vmul.f32 -1.442695, %v1799_v45 }
 0xe20   :  { %2295 = vpow2.f32 %v1944_v47 }
 0xe21   :  { %2297 = vrcp.f32 %v1827_v49 }
 0xe22   :  { %2299 = vrcp.f32 %v1828_v35 }
 0xe23   :  { %2301 = vrcp.f32 %v1829_v53 }
 0xe24   :  { %2303 = vrcp.f32 %v1830_v4 }
 0xe2d   :  { %v2296_v57 = vpop.eup %2295 }
 0xe2e   :  { %v1831_v58 = vadd.f32 1.0, %v2296_v57  ;;  %v2298_v1 = vpop.eup %2297 }
 0xe2f   :  { %v2300_v62 = vpop.eup %2299  ;;  %v1873_v63 = vrot.slane %v2298_v1, %v1860_v36 }
 0xe30   :  { %2305 = vrcp.f32 %v1831_v58  ;;  %v2302_v0 = vpop.eup %2301  ;;  %v1877_v2 = vrot.slane %v2300_v62, %v1860_v36 }
 0xe31   :  { %v1895_v6 = vsel %vm1894_vm7, %v1873_v63, %v1893_v61  ;;  %v2304_v5 = vpop.eup %2303  ;;  %v1881_v7 = vrot.slane %v2302_v0, %v1860_v36 }
 0xe32   :  { %v1897_v3 = vsel %vm1896_vm8, %v1877_v2, %v1895_v6  ;;  %v1885_v11 = vrot.slane %v2304_v5, %v1860_v36 }
 0xe33   :  { %v1899_v8 = vsel %vm1898_vm9, %v1881_v7, %v1897_v3 }
 0xe34   :  { %v1901_v13 = vsel %vm1900_vm10, %v1885_v11, %v1899_v8 }
 0xe3d   :  { %v2306_v9 = vpop.eup %2305 }
 0xe3e   :  { %v1889_v12 = vrot.slane %v2306_v9, %v1860_v36 }
 0xe40   :  { %v1903_v14 = vsel %vm1902_vm11, %v1889_v12, %v1901_v13 }
 0xe41   :  { %1906 = vst.msk [vmem:[%s2795_s9] sm:$0xff] %vm1905_vm12, %v1903_v14 }
 0xe42   :  { %1911 = vsyncpa [#allocation5], 1 }
 0xe43   :  { %1912 = vsyncpa [#allocation7], 1 }
 0xe44   :  { %1913 = vsyncpa [#allocation10], 1 }

</bundles_post_ra>
